<compile_context>
chip_gen: v7x
topology: tpu7x:2x2x1
jax: 0.10.0
libtpu: 0.0.40
codegen_flags: <defaults>
</compile_context>

<pallas_src>
import jax
import jax.numpy as jnp
from jax.experimental import pallas as pl
from jax.experimental.pallas import tpu as pltpu

NUM_CELLS = 256
IN_DIM = 3
OUT_DIM = 1


def policy_mlp_kernel(xt_ref, w1t_ref, b1_ref, w2t_ref, b2_ref, w3_ref, b3_ref,
                      o_ref):
    """One batch tile, feature-major: xt (3, TB) -> o (1, TB)."""
    xt = xt_ref[...]                     # (3, TB)
    w1t = w1t_ref[...]                   # (256, 3)  == PyTorch (out, in) layout

    # Layer 1: K=3 contraction as three broadcast FMAs on the VPU
    # (keeps the MXU / vex slot free for the real matmul below).
    pre1 = (b1_ref[...]
            + w1t[:, 0:1] * xt[0:1, :]
            + w1t[:, 1:2] * xt[1:2, :]
            + w1t[:, 2:3] * xt[2:3, :])                      # (256, TB)
    h1 = jnp.tanh(pre1)

    # Layer 2: the only real matmul -> MXU, f32 accumulation.
    h2 = jnp.tanh(
        jnp.dot(w2t_ref[...], h1.astype(w2t_ref.dtype),
                preferred_element_type=jnp.float32)
        + b2_ref[...])                                       # (256, TB)

    # Layer 3: single output unit -> VPU multiply + sublane reduce
    # (an N=1 MXU matmul would waste 255/256 output columns).
    pre3 = jnp.sum(h2 * w3_ref[...], axis=0, keepdims=True) + b3_ref[...]  # (1, TB)
    o_ref[...] = (2.0 * jnp.tanh(pre3)).astype(o_ref.dtype)


def pendulum_policy_forward(obs, params, *, tile_b=256, use_bf16_matmul=False):
    """obs: (B, 3) float32 -> (B, 1) float32.  Any B >= 1 (padded internally)."""
    w1, b1, w2, b2, w3, b3 = params      # (3,256),(1,256),(256,256),(1,256),(256,1),(1,1)
    B = obs.shape[0]
    assert obs.shape == (B, IN_DIM)
    assert tile_b % 128 == 0, "tile_b must be a multiple of 128 (lane width)"

    num_tiles = pl.cdiv(B, tile_b)
    b_pad = num_tiles * tile_b

    # Feature-major (transposed) layout so batch sits on the lane axis.
    obs_t = jnp.zeros((IN_DIM, b_pad), jnp.float32).at[:, :B].set(obs.T)
    w1t = w1.T                                    # (256, 3)
    b1c = b1.reshape(NUM_CELLS, 1)                # (256, 1)
    w2t = w2.T                                    # (256, 256)  (out, in)
    if use_bf16_matmul:
        w2t = w2t.astype(jnp.bfloat16)            # v6e/v7x MXU-native; f32 accum kept
    b2c = b2.reshape(NUM_CELLS, 1)                # (256, 1)
    w3c = w3.reshape(NUM_CELLS, 1)                # (256, 1)
    b3c = b3.reshape(1, 1)                        # (1, 1)

    grid = (num_tiles,)

    in_specs = [
        pl.BlockSpec((IN_DIM, tile_b), lambda i: (0, i)),          # obs tile
        pl.BlockSpec((NUM_CELLS, IN_DIM), lambda i: (0, 0)),       # W1^T (resident)
        pl.BlockSpec((NUM_CELLS, 1), lambda i: (0, 0)),            # b1
        pl.BlockSpec((NUM_CELLS, NUM_CELLS), lambda i: (0, 0)),    # W2^T (resident)
        pl.BlockSpec((NUM_CELLS, 1), lambda i: (0, 0)),            # b2
        pl.BlockSpec((NUM_CELLS, OUT_DIM), lambda i: (0, 0)),      # w3 column
        pl.BlockSpec((1, 1), lambda i: (0, 0)),                    # b3
    ]
    out_specs = pl.BlockSpec((1, tile_b), lambda i: (0, i))        # lane-dense store

    flops = 2 * b_pad * (IN_DIM * NUM_CELLS + NUM_CELLS * NUM_CELLS
                         + NUM_CELLS * OUT_DIM)
    transcendentals = b_pad * (2 * NUM_CELLS + OUT_DIM)
    bytes_accessed = 4 * (IN_DIM * b_pad + OUT_DIM * b_pad
                          + NUM_CELLS * IN_DIM + NUM_CELLS
                          + NUM_CELLS * NUM_CELLS + NUM_CELLS
                          + NUM_CELLS * OUT_DIM + OUT_DIM)

    out_row = pl.pallas_call(
        policy_mlp_kernel,
        out_shape=jax.ShapeDtypeStruct((1, b_pad), jnp.float32),
        grid_spec=pltpu.PrefetchScalarGridSpec(
            num_scalar_prefetch=0,
            grid=grid,
            in_specs=in_specs,
            out_specs=out_specs,
        ),
        compiler_params=pltpu.CompilerParams(
            dimension_semantics=("parallel",),
        ),
        cost_estimate=pl.CostEstimate(
            flops=flops,
            transcendentals=transcendentals,
            bytes_accessed=bytes_accessed,
        ),
    )(obs_t, w1t, b1c, w2t, b2c, w3c, b3c)

    return out_row[0, :B].reshape(B, OUT_DIM)


def init_params(key):
    """Deterministic synthetic parameters matching the PyTorch module's shapes."""
    k1, k2, k3, k4, k5, k6 = jax.random.split(key, 6)

    # PyTorch Linear default init: U(-1/sqrt(fan_in), 1/sqrt(fan_in)).
    # Stored as (in, out) / (1, out) so the reference computes x @ W + b.
    def lin(kw, kb, fan_in, fan_out):
        bound = 1.0 / jnp.sqrt(fan_in)
        w = jax.random.uniform(kw, (fan_in, fan_out), jnp.float32, -bound, bound)
        b = jax.random.uniform(kb, (1, fan_out), jnp.float32, -bound, bound)
        return w, b

    w1, b1 = lin(k1, k2, IN_DIM, NUM_CELLS)
    w2, b2 = lin(k3, k4, NUM_CELLS, NUM_CELLS)
    w3, b3 = lin(k5, k6, NUM_CELLS, OUT_DIM)
    return (w1, b1, w2, b2, w3, b3)


def reference_forward(obs, params):
    """Pure-JAX reference (full-f32 matmuls) for correctness checking."""
    w1, b1, w2, b2, w3, b3 = params
    hi = jax.lax.Precision.HIGHEST
    h = jnp.tanh(jnp.dot(obs, w1, precision=hi) + b1)
    h = jnp.tanh(jnp.dot(h, w2, precision=hi) + b2)
    h = jnp.tanh(jnp.dot(h, w3, precision=hi) + b3)
    return 2.0 * h


if __name__ == "__main__":
    key = jax.random.PRNGKey(0)
    pkey, xkey = jax.random.split(key)

    params = init_params(pkey)

    batch = 16  # small demo batch; obs = (cos(theta), sin(theta), theta_dot)
    obs = jax.random.normal(xkey, (batch, IN_DIM), dtype=jnp.float32)

    out = pendulum_policy_forward(obs, params)   # ragged batch handled via padding
    out = jax.block_until_ready(out)

    ref = reference_forward(obs, params)
    assert out.shape == (batch, OUT_DIM)
    # f32 MXU multi-pass vs XLA rounding differs slightly; 1e-4 abs on an
    # output bounded to [-2, 2] is still a tight check.
    assert jnp.allclose(out, ref, atol=1e-4, rtol=1e-4), "mismatch vs JAX reference"

    print("KERNEL_OK")
</pallas_src>

<mosaic_0001>
module attributes {stable_mosaic.version = 11 : i64} {
  func.func @policy_mlp_kernel(%arg0: i32, %arg1: memref<3x256xf32, #tpu.memory_space<vmem>>, %arg2: memref<256x3xf32, #tpu.memory_space<vmem>>, %arg3: memref<256x1xf32, #tpu.memory_space<vmem>>, %arg4: memref<256x256xf32, #tpu.memory_space<vmem>>, %arg5: memref<256x1xf32, #tpu.memory_space<vmem>>, %arg6: memref<256x1xf32, #tpu.memory_space<vmem>>, %arg7: memref<1x1xf32, #tpu.memory_space<vmem>>, %arg8: memref<1x256xf32, #tpu.memory_space<vmem>>) attributes {dimension_semantics = [#tpu.dimension_semantics<parallel>], iteration_bounds = array<i64: 1>, scalar_prefetch = 0 : i64, scratch_operands = 0 : i64, tpu.core_type = #tpu.core_type<tc>, window_params = [{transform_indices = @transform_0, window_bounds = array<i64: 3, 256>}, {pipeline_mode = #tpu.pipeline_mode<synchronous>, transform_indices = @transform_1, window_bounds = array<i64: 256, 3>}, {pipeline_mode = #tpu.pipeline_mode<synchronous>, transform_indices = @transform_2, window_bounds = array<i64: 256, 1>}, {pipeline_mode = #tpu.pipeline_mode<synchronous>, transform_indices = @transform_3, window_bounds = array<i64: 256, 256>}, {pipeline_mode = #tpu.pipeline_mode<synchronous>, transform_indices = @transform_4, window_bounds = array<i64: 256, 1>}, {pipeline_mode = #tpu.pipeline_mode<synchronous>, transform_indices = @transform_5, window_bounds = array<i64: 256, 1>}, {pipeline_mode = #tpu.pipeline_mode<synchronous>, transform_indices = @transform_6, window_bounds = array<i64: 1, 1>}, {transform_indices = @transform_7, window_bounds = array<i64: 1, 256>}]} {
    %c0 = arith.constant 0 : index
    %c0_0 = arith.constant 0 : index
    %0 = vector.load %arg1[%c0, %c0_0] : memref<3x256xf32, #tpu.memory_space<vmem>>, vector<3x256xf32>
    %c0_1 = arith.constant 0 : index
    %c0_2 = arith.constant 0 : index
    %1 = vector.load %arg2[%c0_1, %c0_2] : memref<256x3xf32, #tpu.memory_space<vmem>>, vector<256x3xf32>
    %c0_3 = arith.constant 0 : index
    %c0_4 = arith.constant 0 : index
    %2 = vector.load %arg3[%c0_3, %c0_4] : memref<256x1xf32, #tpu.memory_space<vmem>>, vector<256x1xf32>
    %3 = vector.extract_strided_slice %1 {offsets = [0, 0], sizes = [256, 1], strides = [1, 1]} : vector<256x3xf32> to vector<256x1xf32>
    %4 = vector.extract_strided_slice %0 {offsets = [0, 0], sizes = [1, 256], strides = [1, 1]} : vector<3x256xf32> to vector<1x256xf32>
    %5 = vector.broadcast %3 : vector<256x1xf32> to vector<256x256xf32>
    %6 = vector.broadcast %4 : vector<1x256xf32> to vector<256x256xf32>
    %7 = arith.mulf %5, %6 : vector<256x256xf32>
    %8 = vector.broadcast %2 : vector<256x1xf32> to vector<256x256xf32>
    %9 = arith.addf %8, %7 : vector<256x256xf32>
    %10 = vector.extract_strided_slice %1 {offsets = [0, 1], sizes = [256, 1], strides = [1, 1]} : vector<256x3xf32> to vector<256x1xf32>
    %11 = vector.extract_strided_slice %0 {offsets = [1, 0], sizes = [1, 256], strides = [1, 1]} : vector<3x256xf32> to vector<1x256xf32>
    %12 = vector.broadcast %10 : vector<256x1xf32> to vector<256x256xf32>
    %13 = vector.broadcast %11 : vector<1x256xf32> to vector<256x256xf32>
    %14 = arith.mulf %12, %13 : vector<256x256xf32>
    %15 = arith.addf %9, %14 : vector<256x256xf32>
    %16 = vector.extract_strided_slice %1 {offsets = [0, 2], sizes = [256, 1], strides = [1, 1]} : vector<256x3xf32> to vector<256x1xf32>
    %17 = vector.extract_strided_slice %0 {offsets = [2, 0], sizes = [1, 256], strides = [1, 1]} : vector<3x256xf32> to vector<1x256xf32>
    %18 = vector.broadcast %16 : vector<256x1xf32> to vector<256x256xf32>
    %19 = vector.broadcast %17 : vector<1x256xf32> to vector<256x256xf32>
    %20 = arith.mulf %18, %19 : vector<256x256xf32>
    %21 = arith.addf %15, %20 : vector<256x256xf32>
    %22 = math.tanh %21 : vector<256x256xf32>
    %c0_5 = arith.constant 0 : index
    %c0_6 = arith.constant 0 : index
    %23 = vector.load %arg4[%c0_5, %c0_6] : memref<256x256xf32, #tpu.memory_space<vmem>>, vector<256x256xf32>
    %cst = arith.constant dense<0.000000e+00> : vector<256x256xf32>
    %24 = tpu.matmul %23, %22, %cst {dimension_numbers = #tpu.dot_dimension_numbers<[1], [0], [0], [1], [0, 0, 1, 1], [], []>} : vector<256x256xf32>, vector<256x256xf32>, vector<256x256xf32> -> vector<256x256xf32>
    %c0_7 = arith.constant 0 : index
    %c0_8 = arith.constant 0 : index
    %25 = vector.load %arg5[%c0_7, %c0_8] : memref<256x1xf32, #tpu.memory_space<vmem>>, vector<256x1xf32>
    %26 = vector.broadcast %25 : vector<256x1xf32> to vector<256x256xf32>
    %27 = arith.addf %24, %26 : vector<256x256xf32>
    %28 = math.tanh %27 : vector<256x256xf32>
    %c0_9 = arith.constant 0 : index
    %c0_10 = arith.constant 0 : index
    %29 = vector.load %arg6[%c0_9, %c0_10] : memref<256x1xf32, #tpu.memory_space<vmem>>, vector<256x1xf32>
    %30 = vector.broadcast %29 : vector<256x1xf32> to vector<256x256xf32>
    %31 = arith.mulf %28, %30 : vector<256x256xf32>
    %cst_11 = arith.constant dense<0.000000e+00> : vector<256xf32>
    %32 = vector.multi_reduction <add>, %31, %cst_11 [0] : vector<256x256xf32> to vector<256xf32>
    %33 = vector.shape_cast %32 : vector<256xf32> to vector<1x256xf32>
    %c0_12 = arith.constant 0 : index
    %c0_13 = arith.constant 0 : index
    %34 = vector.load %arg7[%c0_12, %c0_13] : memref<1x1xf32, #tpu.memory_space<vmem>>, vector<1x1xf32>
    %35 = vector.broadcast %34 : vector<1x1xf32> to vector<1x256xf32>
    %36 = arith.addf %33, %35 : vector<1x256xf32>
    %37 = math.tanh %36 : vector<1x256xf32>
    %cst_14 = arith.constant 2.000000e+00 : f32
    %38 = vector.broadcast %cst_14 : f32 to vector<1x256xf32>
    %39 = arith.mulf %38, %37 : vector<1x256xf32>
    %c0_15 = arith.constant 0 : index
    %c0_16 = arith.constant 0 : index
    %40 = vector.load %arg8[%c0_15, %c0_16] : memref<1x256xf32, #tpu.memory_space<vmem>>, vector<1x256xf32>
    tpu.vector_store %arg8[%c0_15, %c0_16], %39 {strides = array<i32>} : memref<1x256xf32, #tpu.memory_space<vmem>>, vector<1x256xf32>,
    return
  }
  func.func @transform_0(%arg0: i32) -> (i32, i32) {
    %c0_i32 = arith.constant 0 : i32
    %c0_i32_0 = arith.constant 0 : i32
    return %c0_i32, %arg0 : i32, i32
  }
  func.func @transform_1(%arg0: i32) -> (i32, i32) {
    %c0_i32 = arith.constant 0 : i32
    %c0_i32_0 = arith.constant 0 : i32
    %c0_i32_1 = arith.constant 0 : i32
    return %c0_i32, %c0_i32_0 : i32, i32
  }
  func.func @transform_2(%arg0: i32) -> (i32, i32) {
    %c0_i32 = arith.constant 0 : i32
    %c0_i32_0 = arith.constant 0 : i32
    %c0_i32_1 = arith.constant 0 : i32
    return %c0_i32, %c0_i32_0 : i32, i32
  }
  func.func @transform_3(%arg0: i32) -> (i32, i32) {
    %c0_i32 = arith.constant 0 : i32
    %c0_i32_0 = arith.constant 0 : i32
    %c0_i32_1 = arith.constant 0 : i32
    return %c0_i32, %c0_i32_0 : i32, i32
  }
  func.func @transform_4(%arg0: i32) -> (i32, i32) {
    %c0_i32 = arith.constant 0 : i32
    %c0_i32_0 = arith.constant 0 : i32
    %c0_i32_1 = arith.constant 0 : i32
    return %c0_i32, %c0_i32_0 : i32, i32
  }
  func.func @transform_5(%arg0: i32) -> (i32, i32) {
    %c0_i32 = arith.constant 0 : i32
    %c0_i32_0 = arith.constant 0 : i32
    %c0_i32_1 = arith.constant 0 : i32
    return %c0_i32, %c0_i32_0 : i32, i32
  }
  func.func @transform_6(%arg0: i32) -> (i32, i32) {
    %c0_i32 = arith.constant 0 : i32
    %c0_i32_0 = arith.constant 0 : i32
    %c0_i32_1 = arith.constant 0 : i32
    return %c0_i32, %c0_i32_0 : i32, i32
  }
  func.func @transform_7(%arg0: i32) -> (i32, i32) {
    %c0_i32 = arith.constant 0 : i32
    %c0_i32_0 = arith.constant 0 : i32
    return %c0_i32, %arg0 : i32, i32
  }
}

</mosaic_0001>

<bundles_post_ra>
// kernel: tpu_custom_call.1
= control target key start
LH: loop header
LB: loop body
LE: loop exit
PB: predicated region body
PF: predicated region fallthrough
CT: control target
= control target key end

     0   :  { %s4226_s0 = inlined_call_operand.vmem [shape: f32[3,256], index: 0, kind: input, shape index: {}]   ;;  %s4227_s1 = inlined_call_operand.vmem [shape: f32[256,3], index: 1, kind: input, shape index: {}]   ;;  %s4228_s2 = inlined_call_operand.vmem [shape: f32[256,1], index: 2, kind: input, shape index: {}]   ;;  %s4229_s3 = inlined_call_operand.vmem [shape: f32[256,256], index: 3, kind: input, shape index: {}]   ;;  %s4230_s4 = inlined_call_operand.vmem [shape: f32[256,1], index: 4, kind: input, shape index: {}]   ;;  %s4231_s5 = inlined_call_operand.vmem [shape: f32[256,1], index: 5, kind: input, shape index: {}]   ;;  %s4232_s6 = inlined_call_operand.<no memory space> [shape: f32[1,1], index: 6, kind: input, shape index: {}]   ;;  %s4233_s7 = inlined_call_operand.hbm [shape: f32[1,256], index: 7, kind: output, shape index: {}]  }
   0x1   :  { %v12_v0 = vstv %s4232_s6 }
   0x2   :  { %13 = vst [vmem:[#allocation2] sm:$0x1] %v12_v0 }
   0x3   :  { %v2606_v1 = vld [vmem:[%s4227_s1 + $0x10] sm:$0xff]  ;;  %v2611_v2 = vld [vmem:[%s4227_s1] sm:$0xff]  ;;  %v4234_v3 = vmov 0   ;;  %v2620_v4 = vld [vmem:[%s4227_s1 + $0x18] sm:$0xff] }
   0x4   :  { %2235 = vset.pattern.permute.xlu1 %v4234_v3  ;;  %2234 = vset.pattern.permute.xlu0 %v4234_v3  ;;  %v2625_v5 = vld [vmem:[%s4227_s1 + $0x8] sm:$0xff]  ;;  %v2637_v7 = vld [vmem:[%s4227_s1 + $0x20] sm:$0xff]  ;;  %v2644_v8 = vld [vmem:[%s4227_s1 + $0x38] sm:$0xff] }
   0x5   :  { %106 = vperm.xlu1 %2235, %v2606_v1   ;;  %96 = vperm.xlu0 %2234, %v2611_v2   ;;  %v2632_v6 = vld [vmem:[%s4227_s1 + $0x28] sm:$0xff]  ;;  %v2649_v9 = vld [vmem:[%s4227_s1 + $0x30] sm:$0xff]  ;;  %v2661_v11 = vld [vmem:[%s4227_s1 + $0x40] sm:$0xff] }
   0x6   :  { %v2656_v10 = vld [vmem:[%s4227_s1 + $0x48] sm:$0xff]  ;;  %v2668_v12 = vld [vmem:[%s4227_s1 + $0x58] sm:$0xff]  ;;  %v2673_v13 = vld [vmem:[%s4227_s1 + $0x50] sm:$0xff] }
   0x9   :  { %111 = vperm.xlu1 %2235, %v2620_v4   ;;  %101 = vperm.xlu0 %2234, %v2625_v5  }
   0xd   :  { %121 = vperm.xlu1 %2235, %v2632_v6   ;;  %116 = vperm.xlu0 %2234, %v2637_v7  }
  0x11   :  { %131 = vperm.xlu1 %2235, %v2644_v8   ;;  %126 = vperm.xlu0 %2234, %v2649_v9  }
  0x15   :  { %141 = vperm.xlu1 %2235, %v2656_v10   ;;  %136 = vperm.xlu0 %2234, %v2661_v11  }
  0x16   :  { %14 = vsyncpa [#allocation4], 0  ;;  %v2680_v14 = vld [vmem:[%s4227_s1 + $0x68] sm:$0xff]  ;;  %v2685_v15 = vld [vmem:[%s4227_s1 + $0x60] sm:$0xff] }
  0x17   :  { %v2692_v16 = vld [vmem:[%s4227_s1 + $0x78] sm:$0xff]  ;;  %v2697_v17 = vld [vmem:[%s4227_s1 + $0x70] sm:$0xff]  ;;  %v2704_v18 = vld [vmem:[%s4227_s1 + $0x88] sm:$0xff] }
  0x18   :  { %v2709_v19 = vld [vmem:[%s4227_s1 + $0x80] sm:$0xff]  ;;  %v2716_v20 = vld [vmem:[%s4227_s1 + $0x98] sm:$0xff]  ;;  %v2721_v21 = vld [vmem:[%s4227_s1 + $0x90] sm:$0xff] }
  0x19   :  { %151 = vperm.xlu1 %2235, %v2668_v12   ;;  %146 = vperm.xlu0 %2234, %v2673_v13   ;;  %v2728_v22 = vld [vmem:[%s4227_s1 + $0xa8] sm:$0xff]  ;;  %v2733_v23 = vld [vmem:[%s4227_s1 + $0xa0] sm:$0xff]  ;;  %v2740_v24 = vld [vmem:[%s4227_s1 + $0xb8] sm:$0xff] }
  0x1a   :  { %v2745_v25 = vld [vmem:[%s4227_s1 + $0xb0] sm:$0xff]  ;;  %v2752_v26 = vld [vmem:[%s4227_s1 + $0xc8] sm:$0xff]  ;;  %v2757_v27 = vld [vmem:[%s4227_s1 + $0xc0] sm:$0xff] }
  0x1b   :  { %v2764_v28 = vld [vmem:[%s4227_s1 + $0xd8] sm:$0xff]  ;;  %v2769_v29 = vld [vmem:[%s4227_s1 + $0xd0] sm:$0xff]  ;;  %v2776_v30 = vld [vmem:[%s4227_s1 + $0xe8] sm:$0xff] }
  0x1c   :  { %v2781_v31 = vld [vmem:[%s4227_s1 + $0xe0] sm:$0xff]  ;;  %v2788_v32 = vld [vmem:[%s4227_s1 + $0xf8] sm:$0xff]  ;;  %v2793_v33 = vld [vmem:[%s4227_s1 + $0xf0] sm:$0xff] }
  0x1d   :  { %161 = vperm.xlu1 %2235, %v2680_v14   ;;  %156 = vperm.xlu0 %2234, %v2685_v15   ;;  %v63_v34 = vld [vmem:[%s4228_s2 + $0x8] sm:$0xff]  ;;  %v62_v35 = vld [vmem:[%s4228_s2] sm:$0xff]  ;;  %v65_v36 = vld [vmem:[%s4228_s2 + $0x18] sm:$0xff] }
  0x1e   :  { %v64_v37 = vld [vmem:[%s4228_s2 + $0x10] sm:$0xff]  ;;  %v67_v38 = vld [vmem:[%s4228_s2 + $0x28] sm:$0xff]  ;;  %v66_v39 = vld [vmem:[%s4228_s2 + $0x20] sm:$0xff] }
  0x1f   :  { %v69_v40 = vld [vmem:[%s4228_s2 + $0x38] sm:$0xff]  ;;  %v68_v41 = vld [vmem:[%s4228_s2 + $0x30] sm:$0xff]  ;;  %v71_v42 = vld [vmem:[%s4228_s2 + $0x48] sm:$0xff] }
  0x20   :  { %v70_v43 = vld [vmem:[%s4228_s2 + $0x40] sm:$0xff]  ;;  %v73_v44 = vld [vmem:[%s4228_s2 + $0x58] sm:$0xff]  ;;  %v72_v45 = vld [vmem:[%s4228_s2 + $0x50] sm:$0xff] }
  0x21   :  { %171 = vperm.xlu1 %2235, %v2692_v16   ;;  %166 = vperm.xlu0 %2234, %v2697_v17   ;;  %v75_v46 = vld [vmem:[%s4228_s2 + $0x68] sm:$0xff]  ;;  %v74_v47 = vld [vmem:[%s4228_s2 + $0x60] sm:$0xff]  ;;  %v77_v48 = vld [vmem:[%s4228_s2 + $0x78] sm:$0xff] }
  0x22   :  { %v76_v49 = vld [vmem:[%s4228_s2 + $0x70] sm:$0xff]  ;;  %v79_v50 = vld [vmem:[%s4228_s2 + $0x88] sm:$0xff]  ;;  %v78_v51 = vld [vmem:[%s4228_s2 + $0x80] sm:$0xff] }
  0x23   :  { %v81_v52 = vld [vmem:[%s4228_s2 + $0x98] sm:$0xff]  ;;  %v80_v53 = vld [vmem:[%s4228_s2 + $0x90] sm:$0xff]  ;;  %v83_v54 = vld [vmem:[%s4228_s2 + $0xa8] sm:$0xff] }
  0x24   :  { %v82_v55 = vld [vmem:[%s4228_s2 + $0xa0] sm:$0xff]  ;;  %v85_v56 = vld [vmem:[%s4228_s2 + $0xb8] sm:$0xff]  ;;  %v84_v57 = vld [vmem:[%s4228_s2 + $0xb0] sm:$0xff] }
  0x25   :  { %181 = vperm.xlu1 %2235, %v2704_v18   ;;  %176 = vperm.xlu0 %2234, %v2709_v19   ;;  %v87_v58 = vld [vmem:[%s4228_s2 + $0xc8] sm:$0xff]  ;;  %v86_v59 = vld [vmem:[%s4228_s2 + $0xc0] sm:$0xff]  ;;  %v89_v60 = vld [vmem:[%s4228_s2 + $0xd8] sm:$0xff] }
  0x26   :  { %v88_v61 = vld [vmem:[%s4228_s2 + $0xd0] sm:$0xff]  ;;  %v91_v62 = vld [vmem:[%s4228_s2 + $0xe8] sm:$0xff]  ;;  %v90_v63 = vld [vmem:[%s4228_s2 + $0xe0] sm:$0xff] }
  0x27   :  { %v93_v0 = vld [vmem:[%s4228_s2 + $0xf8] sm:$0xff] }
  0x29   :  { %191 = vperm.xlu1 %2235, %v2716_v20   ;;  %186 = vperm.xlu0 %2234, %v2721_v21  }
  0x2d   :  { %201 = vperm.xlu1 %2235, %v2728_v22   ;;  %196 = vperm.xlu0 %2234, %v2733_v23  }
  0x31   :  { %211 = vperm.xlu1 %2235, %v2740_v24   ;;  %206 = vperm.xlu0 %2234, %v2745_v25  }
  0x35   :  { %221 = vperm.xlu1 %2235, %v2752_v26   ;;  %216 = vperm.xlu0 %2234, %v2757_v27  }
  0x39   :  { %231 = vperm.xlu1 %2235, %v2764_v28   ;;  %226 = vperm.xlu0 %2234, %v2769_v29  }
  0x3d   :  { %241 = vperm.xlu1 %2235, %v2776_v30   ;;  %236 = vperm.xlu0 %2234, %v2781_v31  }
  0x41   :  { %251 = vperm.xlu1 %2235, %v2788_v32   ;;  %246 = vperm.xlu0 %2234, %v2793_v33  }
  0x45   :  { %344 = vperm.xlu1 %2235, %v63_v34   ;;  %339 = vperm.xlu0 %2234, %v62_v35   ;;  %v92_v34 = vld [vmem:[%s4228_s2 + $0xf0] sm:$0xff] }
  0x49   :  { %354 = vperm.xlu1 %2235, %v65_v36   ;;  %349 = vperm.xlu0 %2234, %v64_v37   ;;  %v4240_v37 = vmov 1  }
  0x4d   :  { %364 = vperm.xlu1 %2235, %v67_v38   ;;  %359 = vperm.xlu0 %2234, %v66_v39   ;;  %v4237_v38 = vmov 2  }
  0x51   :  { %374 = vperm.xlu1 %2235, %v69_v40   ;;  %369 = vperm.xlu0 %2234, %v68_v41  }
  0x55   :  { %384 = vperm.xlu1 %2235, %v71_v42   ;;  %379 = vperm.xlu0 %2234, %v70_v43  }
  0x59   :  { %394 = vperm.xlu1 %2235, %v73_v44   ;;  %389 = vperm.xlu0 %2234, %v72_v45  }
  0x5d   :  { %404 = vperm.xlu1 %2235, %v75_v46   ;;  %399 = vperm.xlu0 %2234, %v74_v47  }
  0x61   :  { %414 = vperm.xlu1 %2235, %v77_v48   ;;  %409 = vperm.xlu0 %2234, %v76_v49  }
  0x65   :  { %424 = vperm.xlu1 %2235, %v79_v50   ;;  %419 = vperm.xlu0 %2234, %v78_v51  }
  0x69   :  { %434 = vperm.xlu1 %2235, %v81_v52   ;;  %429 = vperm.xlu0 %2234, %v80_v53  }
  0x6d   :  { %444 = vperm.xlu1 %2235, %v83_v54   ;;  %439 = vperm.xlu0 %2234, %v82_v55  }
  0x71   :  { %454 = vperm.xlu1 %2235, %v85_v56   ;;  %449 = vperm.xlu0 %2234, %v84_v57  }
  0x75   :  { %464 = vperm.xlu1 %2235, %v87_v58   ;;  %459 = vperm.xlu0 %2234, %v86_v59  }
  0x79   :  { %474 = vperm.xlu1 %2235, %v89_v60   ;;  %469 = vperm.xlu0 %2234, %v88_v61  }
  0x7d   :  { %484 = vperm.xlu1 %2235, %v91_v62   ;;  %479 = vperm.xlu0 %2234, %v90_v63  }
  0x81   :  { %494 = vperm.xlu1 %2235, %v93_v0   ;;  %489 = vperm.xlu0 %2234, %v92_v34  }
  0x84   :  { %v2893_v35 = vpop.permute.xlu1 %106  ;;  %v2895_v36 = vpop.permute.xlu0 %96 }
  0x85   :  { %2236 = vset.pattern.permute.xlu1 %v4240_v37  ;;  %2238 = vset.pattern.permute.xlu0 %v4237_v38 }
  0x86   :  { %566 = vperm.xlu1 %2236, %v2625_v5   ;;  %840 = vperm.xlu0 %2238, %v2625_v5  }
  0x88   :  { %v2901_v39 = vpop.permute.xlu1 %111  ;;  %v2903_v40 = vpop.permute.xlu0 %101 }
  0x8a   :  { %570 = vperm.xlu1 %2236, %v2606_v1   ;;  %2239 = vset.pattern.permute.xlu0 %v4240_v37 }
  0x8b   :  { %562 = vperm.xlu0 %2239, %v2611_v2  }
  0x8c   :  { %v2908_v41 = vpop.permute.xlu1 %121  ;;  %v2910_v42 = vpop.permute.xlu0 %116 }
  0x8e   :  { %2237 = vset.pattern.permute.xlu1 %v4237_v38 }
  0x8f   :  { %836 = vperm.xlu1 %2237, %v2611_v2   ;;  %574 = vperm.xlu0 %2239, %v2620_v4  }
  0x90   :  { %v2915_v5 = vpop.permute.xlu1 %131  ;;  %v2917_v43 = vpop.permute.xlu0 %126 }
  0x93   :  { %844 = vperm.xlu1 %2237, %v2606_v1   ;;  %578 = vperm.xlu0 %2239, %v2637_v7  }
  0x94   :  { %v2921_v44 = vpop.permute.xlu1 %141  ;;  %v2923_v45 = vpop.permute.xlu0 %136 }
  0x97   :  { %848 = vperm.xlu1 %2237, %v2620_v4   ;;  %594 = vperm.xlu0 %2239, %v2661_v11  }
  0x98   :  { %v2927_v46 = vpop.permute.xlu1 %151  ;;  %v2929_v2 = vpop.permute.xlu0 %146 }
  0x9b   :  { %2240 = vset.pattern.permute.xlu1 %v4240_v37  ;;  %610 = vperm.xlu0 %2239, %v2685_v15  }
  0x9c   :  { %v2933_v47 = vpop.permute.xlu1 %161  ;;  %582 = vperm.xlu1 %2240, %v2632_v6   ;;  %v2936_v1 = vpop.permute.xlu0 %156 }
  0x9d   :  { %4280 = vst [vmem:[#allocation6_spill] sm:$0xff] %v2933_v47  ;;  %4281 = vst [vmem:[#allocation7_spill] sm:$0xff] %v2936_v1 }
  0x9f   :  { %626 = vperm.xlu0 %2239, %v2709_v19  }
  0xa0   :  { %v2939_v48 = vpop.permute.xlu1 %171  ;;  %2241 = vset.pattern.permute.xlu1 %v4237_v38  ;;  %v2942_v4 = vpop.permute.xlu0 %166 }
  0xa1   :  { %4282 = vst [vmem:[#allocation8_spill] sm:$0xff] %v2939_v48  ;;  %4283 = vst [vmem:[#allocation9_spill] sm:$0xff] %v2942_v4  ;;  %852 = vperm.xlu1 %2241, %v2637_v7  }
  0xa3   :  { %642 = vperm.xlu0 %2239, %v2733_v23  }
  0xa4   :  { %v2946_v49 = vpop.permute.xlu1 %181  ;;  %v2948_v50 = vpop.permute.xlu0 %176 }
  0xa5   :  { %4284 = vst [vmem:[#allocation10_spill] sm:$0xff] %v2946_v49  ;;  %4285 = vst [vmem:[#allocation11_spill] sm:$0xff] %v2948_v50  ;;  %2242 = vset.pattern.permute.xlu1 %v4240_v37 }
  0xa6   :  { %586 = vperm.xlu1 %2242, %v2649_v9  }
  0xa7   :  { %658 = vperm.xlu0 %2239, %v2757_v27  }
  0xa8   :  { %v2953_v51 = vpop.permute.xlu1 %191  ;;  %v2955_v52 = vpop.permute.xlu0 %186 }
  0xa9   :  { %4286 = vst [vmem:[#allocation12_spill] sm:$0xff] %v2953_v51  ;;  %4287 = vst [vmem:[#allocation13_spill] sm:$0xff] %v2955_v52 }
  0xaa   :  { %590 = vperm.xlu1 %2242, %v2644_v8  }
  0xab   :  { %674 = vperm.xlu0 %2239, %v2781_v31  }
  0xac   :  { %v2959_v7 = vpop.permute.xlu1 %201  ;;  %v2961_v53 = vpop.permute.xlu0 %196 }
  0xad   :  { %4288 = vst [vmem:[#allocation14_spill] sm:$0xff] %v2959_v7 }
  0xae   :  { %2243 = vset.pattern.permute.xlu1 %v4237_v38 }
  0xaf   :  { %864 = vperm.xlu1 %2243, %v2644_v8   ;;  %2264 = vset.pattern.permute.xlu0 %v4237_v38 }
  0xb0   :  { %v2966_v54 = vpop.permute.xlu1 %211  ;;  %v2968_v55 = vpop.permute.xlu0 %206  ;;  %856 = vperm.xlu0 %2264, %v2632_v6  }
  0xb1   :  { %4289 = vst [vmem:[#allocation15_spill] sm:$0xff] %v2966_v54  ;;  %4290 = vst [vmem:[#allocation16_spill] sm:$0xff] %v2968_v55 }
  0xb3   :  { %2244 = vset.pattern.permute.xlu1 %v4240_v37 }
  0xb4   :  { %v2972_v56 = vpop.permute.xlu1 %221  ;;  %598 = vperm.xlu1 %2244, %v2656_v10   ;;  %v2975_v57 = vpop.permute.xlu0 %216  ;;  %860 = vperm.xlu0 %2264, %v2649_v9  }
  0xb5   :  { %4291 = vst [vmem:[#allocation17_spill] sm:$0xff] %v2972_v56 }
  0xb8   :  { %v2978_v58 = vpop.permute.xlu1 %231  ;;  %2245 = vset.pattern.permute.xlu1 %v4237_v38  ;;  %v2981_v8 = vpop.permute.xlu0 %226  ;;  %872 = vperm.xlu0 %2264, %v2656_v10  }
  0xb9   :  { %4292 = vst [vmem:[#allocation18_spill] sm:$0xff] %v2978_v58  ;;  %4293 = vst [vmem:[#allocation19_spill] sm:$0xff] %v2981_v8  ;;  %868 = vperm.xlu1 %2245, %v2661_v11  }
  0xbc   :  { %v2985_v6 = vpop.permute.xlu1 %241  ;;  %v2987_v59 = vpop.permute.xlu0 %236  ;;  %876 = vperm.xlu0 %2264, %v2673_v13  }
  0xbd   :  { %4294 = vst [vmem:[#allocation20_spill] sm:$0xff] %v2985_v6  ;;  %2246 = vset.pattern.permute.xlu1 %v4240_v37  ;;  %v4303_v6 = vmov 1  }
  0xbe   :  { %602 = vperm.xlu1 %2246, %v2673_v13  }
  0xc0   :  { %v2992_v9 = vpop.permute.xlu1 %251  ;;  %v2994_v60 = vpop.permute.xlu0 %246  ;;  %888 = vperm.xlu0 %2264, %v2680_v14  }
  0xc1   :  { %4295 = vst [vmem:[#allocation21_spill] sm:$0xff] %v2992_v9  ;;  %4296 = vst [vmem:[#allocation22_spill] sm:$0xff] %v2994_v60  ;;  %v4300_v60 = vmov 2  }
  0xc2   :  { %606 = vperm.xlu1 %2246, %v2668_v12  }
  0xc4   :  { %v2998_v10 = vpop.permute.xlu1 %344  ;;  %v3000_v11 = vpop.permute.xlu0 %339  ;;  %892 = vperm.xlu0 %2264, %v2697_v17  }
  0xc6   :  { %2247 = vset.pattern.permute.xlu1 %v4237_v38 }
  0xc7   :  { %880 = vperm.xlu1 %2247, %v2668_v12  }
  0xc8   :  { %v3005_v61 = vpop.permute.xlu1 %354  ;;  %v3007_v13 = vpop.permute.xlu0 %349  ;;  %904 = vperm.xlu0 %2264, %v2704_v18  }
  0xcb   :  { %2248 = vset.pattern.permute.xlu1 %v4240_v37 }
  0xcc   :  { %v3011_v62 = vpop.permute.xlu1 %364  ;;  %v3013_v63 = vpop.permute.xlu0 %359  ;;  %614 = vperm.xlu1 %2248, %v2680_v14   ;;  %908 = vperm.xlu0 %2264, %v2721_v21  }
  0xd0   :  { %v3017_v0 = vpop.permute.xlu1 %374  ;;  %v3019_v34 = vpop.permute.xlu0 %369  ;;  %2249 = vset.pattern.permute.xlu1 %v4237_v38  ;;  %920 = vperm.xlu0 %2264, %v2728_v22  }
  0xd1   :  { %884 = vperm.xlu1 %2249, %v2685_v15  }
  0xd4   :  { %v3024_v12 = vpop.permute.xlu1 %384  ;;  %v3026_v3 = vpop.permute.xlu0 %379  ;;  %924 = vperm.xlu0 %2264, %v2745_v25  }
  0xd5   :  { %2250 = vset.pattern.permute.xlu1 %v4240_v37 }
  0xd6   :  { %618 = vperm.xlu1 %2250, %v2697_v17  }
  0xd8   :  { %v3031_v14 = vpop.permute.xlu1 %394  ;;  %v3033_v9 = vpop.permute.xlu0 %389  ;;  %936 = vperm.xlu0 %2264, %v2752_v26  }
  0xd9   :  { %4297 = vst [vmem:[#allocation23_spill] sm:$0xff] %v3031_v14 }
  0xda   :  { %622 = vperm.xlu1 %2250, %v2692_v16  }
  0xdc   :  { %v3037_v15 = vpop.permute.xlu1 %404  ;;  %v3039_v38 = vpop.permute.xlu0 %399  ;;  %940 = vperm.xlu0 %2264, %v2769_v29  }
  0xdd   :  { %4298 = vst [vmem:[#allocation24_spill] sm:$0xff] %v3037_v15  ;;  %4299 = vst [vmem:[#allocation25_spill] sm:$0xff] %v3039_v38 }
  0xde   :  { %2251 = vset.pattern.permute.xlu1 %v4300_v60 }
  0xdf   :  { %896 = vperm.xlu1 %2251, %v2692_v16   ;;  %v4308_v16 = vmov 0  }
  0xe0   :  { %v3044_v37 = vpop.permute.xlu1 %414  ;;  %v3046_v17 = vpop.permute.xlu0 %409  ;;  %952 = vperm.xlu0 %2264, %v2776_v30  }
  0xe1   :  { %4301 = vst [vmem:[#allocation26_spill] sm:$0xff] %v3044_v37  ;;  %4302 = vst [vmem:[#allocation27_spill] sm:$0xff] %v3046_v17 }
  0xe3   :  { %2252 = vset.pattern.permute.xlu1 %v4303_v6 }
  0xe4   :  { %v3050_v58 = vpop.permute.xlu1 %424  ;;  %v3052_v8 = vpop.permute.xlu0 %419  ;;  %630 = vperm.xlu1 %2252, %v2704_v18   ;;  %956 = vperm.xlu0 %2264, %v2793_v33  }
  0xe5   :  { %4304 = vst [vmem:[#allocation28_spill] sm:$0xff] %v3050_v58  ;;  %4305 = vst [vmem:[#allocation29_spill] sm:$0xff] %v3052_v8 }
  0xe8   :  { %v3056_v56 = vpop.permute.xlu1 %434  ;;  %v3058_v54 = vpop.permute.xlu0 %429  ;;  %2253 = vset.pattern.permute.xlu1 %v4300_v60  ;;  %2269 = vset.pattern.permute.xlu0 %v4308_v16 }
  0xe9   :  { %4306 = vst [vmem:[#allocation30_spill] sm:$0xff] %v3056_v56  ;;  %4307 = vst [vmem:[#allocation31_spill] sm:$0xff] %v3058_v54  ;;  %900 = vperm.xlu1 %2253, %v2709_v19   ;;  %v4257_v56 = vlaneseq }
  0xeb   :  { %v3079_v52 = vshrl.u32 %v4257_v56, 7 }
  0xec   :  { %v3063_v55 = vpop.permute.xlu1 %444  ;;  %v3065_v7 = vpop.permute.xlu0 %439 }
  0xed   :  { %4309 = vst [vmem:[#allocation32_spill] sm:$0xff] %v3063_v55  ;;  %2254 = vset.pattern.permute.xlu1 %v4303_v6  ;;  %4313 = vst [vmem:[#allocation36_spill] sm:$0xff] %v3079_v52  ;;  %v691_v56 = vsub.s32 1, %v3079_v52  ;;  %v695_v8 = vsub.s32 5, %v3079_v52  ;;  %v965_v58 = vsub.s32 2, %v3079_v52  ;;  %v969_v48 = vsub.s32 6, %v3079_v52 }
  0xee   :  { %634 = vperm.xlu1 %2254, %v2721_v21  }
  0xf0   :  { %v3069_v18 = vpop.permute.xlu1 %454  ;;  %v3071_v51 = vpop.permute.xlu0 %449 }
  0xf1   :  { %4310 = vst [vmem:[#allocation33_spill] sm:$0xff] %v3069_v18  ;;  %4311 = vst [vmem:[#allocation34_spill] sm:$0xff] %v3071_v51  ;;  %v3088_v18 = vsub.s32 0, %v3079_v52  ;;  %v261_v51 = vsub.s32 4, %v3079_v52 }
  0xf2   :  { %638 = vperm.xlu1 %2254, %v2716_v20  }
  0xf3   :  { %4316 = vst [vmem:[#allocation39_spill] sm:$0xff] %v3088_v18 }
  0xf4   :  { %v3074_v54 = vpop.permute.xlu1 %464  ;;  %v3076_v19 = vpop.permute.xlu0 %459 }
  0xf5   :  { %4312 = vst [vmem:[#allocation35_spill] sm:$0xff] %v3074_v54  ;;  %v29_v54 = vld [vmem:[%s4226_s0] sm:$0x77] }
  0xf6   :  { %2255 = vset.pattern.permute.xlu1 %v4300_v60  ;;  %v262_v50 = vrot.slane %v29_v54, %v261_v51  ;;  %v692_v49 = vrot.slane %v29_v54, %v691_v56  ;;  %v696_v37 = vrot.slane %v29_v54, %v695_v8  ;;  %v970_v8 = vrot.slane %v29_v54, %v969_v48 }
  0xf7   :  { %912 = vperm.xlu1 %2255, %v2716_v20  }
  0xf8   :  { %v3083_v55 = vpop.permute.xlu1 %474  ;;  %v3085_v21 = vpop.permute.xlu0 %469  ;;  %v3112_v38 = vrot.slane %v262_v50, %v3088_v18  ;;  %v3119_v51 = vrot.slane %v696_v37, %v691_v56 }
  0xf9   :  { %4314 = vst [vmem:[#allocation37_spill] sm:$0xff] %v3083_v55  ;;  %4315 = vst [vmem:[#allocation38_spill] sm:$0xff] %v3085_v21  ;;  %v258_v21 = vrot.slane %v29_v54, %v3088_v18 }
  0xfb   :  { %2256 = vset.pattern.permute.xlu1 %v4303_v6  ;;  %v3108_v4 = vrot.slane %v258_v21, %v3088_v18  ;;  %v276_v21 = vmul.f32 %v3112_v38, %v2903_v40 }
  0xfc   :  { %v3097_v20 = vpop.permute.xlu1 %484  ;;  %v3099_v55 = vpop.permute.xlu0 %479  ;;  %646 = vperm.xlu1 %2256, %v2728_v22   ;;  %v3117_v22 = vrot.slane %v692_v49, %v691_v56  ;;  %v3130_v49 = vrot.slane %v970_v8, %v965_v58 }
  0xfd   :  { %4317 = vst [vmem:[#allocation40_spill] sm:$0xff] %v3097_v20  ;;  %v966_v20 = vrot.slane %v29_v54, %v965_v58  ;;  %v275_v52 = vmul.f32 %v3108_v4, %v2903_v40  ;;  %v500_v48 = vadd.f32 %v2998_v10, %v276_v21  ;;  %v273_v40 = vmul.f32 %v3108_v4, %v2895_v36 }
  0xfe   :  { %v274_v54 = vmul.f32 %v3112_v38, %v2895_v36  ;;  %v277_v36 = vmul.f32 %v3108_v4, %v2893_v35 }
  0xff   :  { %v3125_v1 = vrot.slane %v966_v20, %v965_v58  ;;  %v499_v37 = vadd.f32 %v2998_v10, %v275_v52  ;;  %v497_v10 = vadd.f32 %v3000_v11, %v273_v40 }
 0x100   :  { %v3105_v17 = vpop.permute.xlu1 %494  ;;  %2257 = vset.pattern.permute.xlu1 %v4300_v60  ;;  %v3114_v15 = vpop.permute.xlu0 %489  ;;  %v498_v8 = vadd.f32 %v3000_v11, %v274_v54  ;;  %v278_v11 = vmul.f32 %v3112_v38, %v2893_v35  ;;  %v279_v54 = vmul.f32 %v3108_v4, %v2901_v39 }
 0x101   :  { %4318 = vst [vmem:[#allocation41_spill] sm:$0xff] %v3105_v17  ;;  %4319 = vst [vmem:[#allocation42_spill] sm:$0xff] %v3114_v15  ;;  %916 = vperm.xlu1 %2257, %v2733_v23  }
 0x105   :  { %v567_v17 = vpop.permute.xlu1 %566  ;;  %2258 = vset.pattern.permute.xlu1 %v4303_v6  ;;  %v841_v23 = vpop.permute.xlu0 %840 }
 0x106   :  { %v709_v50 = vmul.f32 %v3117_v22, %v567_v17  ;;  %v710_v18 = vmul.f32 %v3119_v51, %v567_v17  ;;  %650 = vperm.xlu1 %2258, %v2745_v25   ;;  %v983_v17 = vmul.f32 %v3125_v1, %v841_v23  ;;  %v984_v58 = vmul.f32 %v3130_v49, %v841_v23 }
 0x108   :  { %v773_v56 = vadd.f32 %v709_v50, %v499_v37  ;;  %v774_v15 = vadd.f32 %v710_v18, %v500_v48 }
 0x109   :  { %v571_v20 = vpop.permute.xlu1 %570 }
 0x10a   :  { %654 = vperm.xlu1 %2258, %v2740_v24   ;;  %v563_v52 = vpop.permute.xlu0 %562  ;;  %v1047_v21 = vadd.f32 %v983_v17, %v773_v56  ;;  %v1048_v50 = vadd.f32 %v984_v58, %v774_v15  ;;  %v711_v18 = vmul.f32 %v3117_v22, %v571_v20  ;;  %v501_v15 = vadd.f32 %v3007_v13, %v277_v36 }
 0x10b   :  { %v707_v25 = vmul.f32 %v3117_v22, %v563_v52  ;;  %v708_v47 = vmul.f32 %v3119_v51, %v563_v52  ;;  %v712_v56 = vmul.f32 %v3119_v51, %v571_v20  ;;  %v502_v52 = vadd.f32 %v3007_v13, %v278_v11 }
 0x10c   :  { %2271 = vtanh.f32 %v1047_v21  ;;  %v503_v13 = vadd.f32 %v3005_v61, %v279_v54 }
 0x10d   :  { %v771_v23 = vadd.f32 %v707_v25, %v497_v10  ;;  %v772_v48 = vadd.f32 %v708_v47, %v498_v8  ;;  %v280_v47 = vmul.f32 %v3112_v38, %v2901_v39  ;;  %2273 = vtanh.f32 %v1048_v50 }
 0x10e   :  { %v837_v37 = vpop.permute.xlu1 %836  ;;  %2259 = vset.pattern.permute.xlu1 %v4300_v60  ;;  %v575_v16 = vpop.permute.xlu0 %574  ;;  %v775_v25 = vadd.f32 %v711_v18, %v501_v15  ;;  %v776_v39 = vadd.f32 %v712_v56, %v502_v52 }
 0x10f   :  { %v981_v14 = vmul.f32 %v3125_v1, %v837_v37  ;;  %v982_v40 = vmul.f32 %v3130_v49, %v837_v37  ;;  %928 = vperm.xlu1 %2259, %v2740_v24   ;;  %v713_v35 = vmul.f32 %v3117_v22, %v575_v16  ;;  %v714_v8 = vmul.f32 %v3119_v51, %v575_v16 }
 0x111   :  { %v1045_v17 = vadd.f32 %v981_v14, %v771_v23  ;;  %v1046_v58 = vadd.f32 %v982_v40, %v772_v48  ;;  %v504_v14 = vadd.f32 %v3005_v61, %v280_v47  ;;  %v777_v16 = vadd.f32 %v713_v35, %v503_v13  ;;  %v1237_v47 = vld [vmem:[%s4230_s4] sm:$0xff] }
 0x112   :  { %v845_v10 = vpop.permute.xlu1 %844  ;;  %v3166_v36 = vpop.permute.xlu0 %578  ;;  %1271 = vperm.xlu0 %2269, %v1237_v47   ;;  %v283_v35 = vmul.f32 %v3108_v4, %v2908_v41  ;;  %v3206_v13 = vmul.f32 %v3112_v38, %v2915_v5  ;;  %v322_v47 = vmul.f32 %v3112_v38, %v2975_v57 }
 0x113   :  { %2275 = vtanh.f32 %v1045_v17  ;;  %v985_v20 = vmul.f32 %v3125_v1, %v845_v10  ;;  %v986_v24 = vmul.f32 %v3130_v49, %v845_v10  ;;  %2260 = vset.pattern.permute.xlu1 %v4303_v6  ;;  %v778_v37 = vadd.f32 %v714_v8, %v504_v14 }
 0x114   :  { %2277 = vtanh.f32 %v1046_v58  ;;  %662 = vperm.xlu1 %2260, %v2752_v26   ;;  %v284_v10 = vmul.f32 %v3112_v38, %v2908_v41  ;;  %v281_v8 = vmul.f32 %v3108_v4, %v2910_v42  ;;  %v3210_v41 = vmul.f32 %v3108_v4, %v2917_v43 }
 0x115   :  { %v1049_v21 = vadd.f32 %v985_v20, %v775_v25  ;;  %v1050_v50 = vadd.f32 %v986_v24, %v776_v39  ;;  %v282_v20 = vmul.f32 %v3112_v38, %v2910_v42  ;;  %v3202_v39 = vmul.f32 %v3108_v4, %v2915_v5 }
 0x116   :  { %v849_v18 = vpop.permute.xlu1 %848  ;;  %v3174_v40 = vpop.permute.xlu0 %594  ;;  %v3214_v42 = vmul.f32 %v3112_v38, %v2917_v43  ;;  %v313_v14 = vmul.f32 %v3108_v4, %v2961_v53  ;;  %v3230_v43 = vmul.f32 %v3108_v4, %v2923_v45 }
 0x117   :  { %v987_v23 = vmul.f32 %v3125_v1, %v849_v18  ;;  %v988_v48 = vmul.f32 %v3130_v49, %v849_v18  ;;  %2279 = vtanh.f32 %v1049_v21  ;;  %v2272_v61 = vpop.eup %2271  ;;  %v314_v21 = vmul.f32 %v3112_v38, %v2961_v53 }
 0x118   :  { %2261 = vset.pattern.permute.xlu1 %v4300_v60  ;;  %2281 = vtanh.f32 %v1050_v50  ;;  %v2274_v56 = vpop.eup %2273  ;;  %v3222_v50 = vmul.f32 %v3108_v4, %v2921_v44  ;;  %v3226_v18 = vmul.f32 %v3112_v38, %v2921_v44  ;;  %v1242_v44 = vld [vmem:[%s4230_s4 + $0x28] sm:$0xff] }
 0x119   :  { %v1051_v11 = vadd.f32 %v987_v23, %v777_v16  ;;  %v1052_v15 = vadd.f32 %v988_v48, %v778_v37  ;;  %932 = vperm.xlu1 %2261, %v2757_v27   ;;  %v537_v37 = vadd.f32 %v3065_v7, %v313_v14  ;;  %v538_v23 = vadd.f32 %v3065_v7, %v314_v21 }
 0x11a   :  { %v3178_v26 = vpop.permute.xlu0 %610  ;;  %v329_v7 = vmul.f32 %v3108_v4, %v2987_v59 }
 0x11b   :  { %2283 = vtanh.f32 %v1051_v11  ;;  %4320 = vst [vmem:[#allocation43_spill] sm:$0xff] %v3178_v26  ;;  %v3180_v54 = vpop.permute.xlu1 %582  ;;  %v715_v26 = vmul.f32 %v3117_v22, %v3166_v36 }
 0x11c   :  { %2285 = vtanh.f32 %v1052_v15 }
 0x11d   :  { %v2276_v17 = vpop.eup %2275  ;;  %2262 = vset.pattern.permute.xlu1 %v4303_v6 }
 0x11e   :  { %v2278_v58 = vpop.eup %2277  ;;  %v2135_v52 = vpack.c.bf16 %v2272_v61, %v2276_v17  ;;  %666 = vperm.xlu1 %2262, %v2769_v29   ;;  %v3187_v27 = vpop.permute.xlu0 %626  ;;  %v1240_v29 = vld [vmem:[%s4230_s4 + $0x18] sm:$0xff]  ;;  %v3242_v61 = vmul.f32 %v3112_v38, %v2923_v45 }
 0x11f   :  { %4321 = vst [vmem:[#allocation44_spill] sm:$0xff] %v3187_v27  ;;  %v2133_v25 = vpack.c.bf16 %v2274_v56, %v2278_v58  ;;  %1286 = vperm.xlu0 %2269, %v1240_v29   ;;  %v321_v56 = vmul.f32 %v3108_v4, %v2975_v57  ;;  %v546_v27 = vadd.f32 %v3076_v19, %v322_v47 }
 0x120   :  { %v853_v24 = vpop.permute.xlu1 %852 }
 0x121   :  { %2134 = vmatprep.subr.bf16.mxu0 %v2133_v25  ;;  %2197 = vmatprep.subr.bf16.mxu1 %v2133_v25  ;;  %v2280_v5 = vpop.eup %2279  ;;  %v507_v25 = vadd.f32 %v3011_v62, %v283_v35  ;;  %v545_v14 = vadd.f32 %v3076_v19, %v321_v56  ;;  %v716_v19 = vmul.f32 %v3119_v51, %v3166_v36 }
 0x122   :  { %2136 = vmatpush1.bf16.msra.mxu0 %v2135_v52  ;;  %2213 = vmatpush1.bf16.msra.mxu1 %v2135_v52  ;;  %v643_v16 = vpop.permute.xlu0 %642  ;;  %v2282_v53 = vpop.eup %2281  ;;  %v330_v52 = vmul.f32 %v3112_v38, %v2987_v59 }
 0x123   :  { %670 = vperm.xlu1 %2262, %v2764_v28   ;;  %v747_v48 = vmul.f32 %v3117_v22, %v643_v16  ;;  %v748_v11 = vmul.f32 %v3119_v51, %v643_v16  ;;  %1296 = vperm.xlu0 %2269, %v1242_v44  }
 0x125   :  { %v2284_v15 = vpop.eup %2283  ;;  %v587_v17 = vpop.permute.xlu1 %586  ;;  %v3253_v29 = vadd.f32 %v747_v48, %v537_v37  ;;  %v3255_v45 = vadd.f32 %v748_v11, %v538_v23  ;;  %v1244_v37 = vld [vmem:[%s4230_s4 + $0x38] sm:$0xff]  ;;  %v508_v23 = vadd.f32 %v3011_v62, %v284_v10  ;;  %v506_v48 = vadd.f32 %v3013_v63, %v282_v20 }
 0x126   :  { %v2286_v58 = vpop.eup %2285  ;;  %v659_v21 = vpop.permute.xlu0 %658  ;;  %v2139_v16 = vpack.c.bf16 %v2284_v15, %v2280_v5  ;;  %v505_v5 = vadd.f32 %v3013_v63, %v281_v8  ;;  %v989_v11 = vmul.f32 %v3125_v1, %v853_v24  ;;  %v553_v15 = vadd.f32 %v3099_v55, %v329_v7 }
 0x127   :  { %2263 = vset.pattern.permute.xlu1 %v4300_v60  ;;  %v2137_v57 = vpack.c.bf16 %v2286_v58, %v2282_v53  ;;  %v755_v59 = vmul.f32 %v3117_v22, %v659_v21  ;;  %v756_v35 = vmul.f32 %v3119_v51, %v659_v21  ;;  %v554_v62 = vadd.f32 %v3099_v55, %v330_v52 }
 0x128   :  { %944 = vperm.xlu1 %2263, %v2764_v28   ;;  %v990_v10 = vmul.f32 %v3130_v49, %v853_v24  ;;  %1306 = vperm.xlu0 %2269, %v1244_v37   ;;  %v779_v8 = vadd.f32 %v715_v26, %v505_v5  ;;  %v717_v63 = vmul.f32 %v3117_v22, %v3180_v54 }
 0x129   :  { %2138 = vmatprep.subr.bf16.mxu0 %v2137_v57  ;;  %2198 = vmatprep.subr.bf16.mxu1 %v2137_v57  ;;  %v591_v53 = vpop.permute.xlu1 %590  ;;  %v3274_v44 = vadd.f32 %v755_v59, %v545_v14  ;;  %v3276_v28 = vadd.f32 %v756_v35, %v546_v27  ;;  %v1246_v27 = vld [vmem:[%s4230_s4 + $0x48] sm:$0xff]  ;;  %v511_v55 = vadd.f32 %v3017_v0, %v3202_v39 }
 0x12a   :  { %2140 = vmatpush1.bf16.msra.mxu0 %v2139_v16  ;;  %2214 = vmatpush1.bf16.msra.mxu1 %v2139_v16  ;;  %v675_v36 = vpop.permute.xlu0 %674  ;;  %v780_v24 = vadd.f32 %v716_v19, %v506_v48  ;;  %v718_v26 = vmul.f32 %v3119_v51, %v3180_v54  ;;  %v721_v47 = vmul.f32 %v3117_v22, %v591_v53  ;;  %v1248_v19 = vld [vmem:[%s4230_s4 + $0x58] sm:$0xff] }
 0x12b   :  { %v763_v20 = vmul.f32 %v3117_v22, %v675_v36  ;;  %v764_v56 = vmul.f32 %v3119_v51, %v675_v36  ;;  %v1053_v7 = vadd.f32 %v989_v11, %v779_v8  ;;  %v722_v58 = vmul.f32 %v3119_v51, %v591_v53 }
 0x12c   :  { %2265 = vset.pattern.permute.xlu1 %v4303_v6  ;;  %v512_v57 = vadd.f32 %v3017_v0, %v3206_v13  ;;  %v509_v39 = vadd.f32 %v3019_v34, %v3210_v41  ;;  %v1054_v16 = vadd.f32 %v990_v10, %v780_v24  ;;  %1316 = vperm.xlu0 %2269, %v1246_v27  }
 0x12d   :  { %678 = vperm.xlu1 %2265, %v2776_v30   ;;  %v3296_v52 = vadd.f32 %v763_v20, %v553_v15  ;;  %v3298_v14 = vadd.f32 %v764_v56, %v554_v62  ;;  %v781_v59 = vadd.f32 %v717_v63, %v507_v25  ;;  %v719_v30 = vmul.f32 %v3117_v22, %v587_v17 }
 0x12e   :  { %v865_v21 = vpop.permute.xlu1 %864  ;;  %v720_v35 = vmul.f32 %v3119_v51, %v587_v17  ;;  %v782_v0 = vadd.f32 %v718_v26, %v508_v23  ;;  %v785_v13 = vadd.f32 %v721_v47, %v511_v55  ;;  %v510_v25 = vadd.f32 %v3019_v34, %v3214_v42  ;;  %v1250_v34 = vld [vmem:[%s4230_s4 + $0x68] sm:$0xff] }
 0x12f   :  { %v995_v54 = vmul.f32 %v3125_v1, %v865_v21  ;;  %v996_v37 = vmul.f32 %v3130_v49, %v865_v21  ;;  %v857_v5 = vpop.permute.xlu0 %856  ;;  %v723_v17 = vmul.f32 %v3117_v22, %v3174_v40  ;;  %2287 = vtanh.f32 %v1053_v7 }
 0x130   :  { %v991_v41 = vmul.f32 %v3125_v1, %v857_v5  ;;  %v992_v53 = vmul.f32 %v3130_v49, %v857_v5  ;;  %v786_v48 = vadd.f32 %v722_v58, %v512_v57  ;;  %2289 = vtanh.f32 %v1054_v16  ;;  %1326 = vperm.xlu0 %2269, %v1248_v19  }
 0x131   :  { %2266 = vset.pattern.permute.xlu1 %v4300_v60  ;;  %v1059_v11 = vadd.f32 %v995_v54, %v785_v13  ;;  %v783_v10 = vadd.f32 %v719_v30, %v509_v39  ;;  %v784_v36 = vadd.f32 %v720_v35, %v510_v25  ;;  %v515_v27 = vadd.f32 %v3024_v12, %v3222_v50 }
 0x132   :  { %948 = vperm.xlu1 %2266, %v2781_v31   ;;  %v1055_v23 = vadd.f32 %v991_v41, %v781_v59  ;;  %v1056_v15 = vadd.f32 %v992_v53, %v782_v0  ;;  %v1060_v8 = vadd.f32 %v996_v37, %v786_v48  ;;  %v513_v55 = vadd.f32 %v3026_v3, %v3230_v43  ;;  %v1254_v37 = vld [vmem:[%s4230_s4 + $0x88] sm:$0xff] }
 0x133   :  { %v599_v62 = vpop.permute.xlu1 %598  ;;  %v861_v20 = vpop.permute.xlu0 %860  ;;  %v724_v24 = vmul.f32 %v3119_v51, %v3174_v40  ;;  %v516_v26 = vadd.f32 %v3024_v12, %v3226_v18  ;;  %v514_v50 = vadd.f32 %v3026_v3, %v3242_v61  ;;  %v293_v59 = vmul.f32 %v3108_v4, %v2929_v2 }
 0x134   :  { %v725_v63 = vmul.f32 %v3117_v22, %v599_v62  ;;  %2291 = vtanh.f32 %v1055_v23  ;;  %v726_v42 = vmul.f32 %v3119_v51, %v599_v62  ;;  %v993_v31 = vmul.f32 %v3125_v1, %v861_v20  ;;  %1336 = vperm.xlu0 %2269, %v1250_v34  }
 0x135   :  { %v994_v56 = vmul.f32 %v3130_v49, %v861_v20  ;;  %2293 = vtanh.f32 %v1056_v15  ;;  %v787_v58 = vadd.f32 %v723_v17, %v513_v55  ;;  %v294_v19 = vmul.f32 %v3112_v38, %v2929_v2 }
 0x136   :  { %2267 = vset.pattern.permute.xlu1 %v4303_v6  ;;  %2295 = vtanh.f32 %v1059_v11  ;;  %v1057_v47 = vadd.f32 %v993_v31, %v783_v10  ;;  %v789_v43 = vadd.f32 %v725_v63, %v515_v27  ;;  %v1252_v6 = vld [vmem:[%s4230_s4 + $0x78] sm:$0xff]  ;;  %v790_v40 = vadd.f32 %v726_v42, %v516_v26  ;;  %v4323_v26 = vld [vmem:[#allocation23_spill] sm:$0xff] }
 0x137   :  { %v1058_v7 = vadd.f32 %v994_v56, %v784_v36  ;;  %682 = vperm.xlu1 %2267, %v2793_v33   ;;  %2297 = vtanh.f32 %v1060_v8  ;;  %v873_v21 = vpop.permute.xlu0 %872  ;;  %v788_v33 = vadd.f32 %v724_v24, %v514_v50  ;;  %v517_v48 = vadd.f32 %v3033_v9, %v293_v59  ;;  %v1256_v42 = vld [vmem:[%s4230_s4 + $0x98] sm:$0xff] }
 0x138   :  { %2299 = vtanh.f32 %v1057_v47  ;;  %v999_v12 = vmul.f32 %v3125_v1, %v873_v21  ;;  %v1000_v18 = vmul.f32 %v3130_v49, %v873_v21  ;;  %v869_v57 = vpop.permute.xlu1 %868  ;;  %1346 = vperm.xlu0 %2269, %v1252_v6   ;;  %v518_v23 = vadd.f32 %v3033_v9, %v294_v19  ;;  %v1238_v9 = vld [vmem:[%s4230_s4 + $0x8] sm:$0xff]  ;;  %v1239_v6 = vld [vmem:[%s4230_s4 + $0x10] sm:$0xff] }
 0x139   :  { %2301 = vtanh.f32 %v1058_v7  ;;  %v997_v39 = vmul.f32 %v3125_v1, %v869_v57  ;;  %v998_v3 = vmul.f32 %v3130_v49, %v869_v57  ;;  %v2288_v54 = vpop.eup %2287  ;;  %v296_v20 = vmul.f32 %v3112_v38, %v2927_v46  ;;  %v4325_v19 = vld [vmem:[#allocation7_spill] sm:$0xff] }
 0x13a   :  { %v1063_v61 = vadd.f32 %v999_v12, %v789_v43  ;;  %v1064_v16 = vadd.f32 %v1000_v18, %v790_v40  ;;  %v2290_v5 = vpop.eup %2289  ;;  %v4322_v24 = vmov 0   ;;  %v1258_v40 = vld [vmem:[%s4230_s4 + $0xa8] sm:$0xff] }
 0x13b   :  { %686 = vperm.xlu1 %2267, %v2788_v32   ;;  %v1061_v30 = vadd.f32 %v997_v39, %v787_v58  ;;  %v1062_v35 = vadd.f32 %v998_v3, %v788_v33  ;;  %v877_v25 = vpop.permute.xlu0 %876  ;;  %v520_v7 = vadd.f32 %v4323_v26, %v296_v20 }
 0x13c   :  { %2303 = vtanh.f32 %v1063_v61  ;;  %1356 = vperm.xlu0 %2269, %v1254_v37   ;;  %v1001_v36 = vmul.f32 %v3125_v1, %v877_v25  ;;  %v4324_v61 = vld [vmem:[#allocation6_spill] sm:$0xff] }
 0x13d   :  { %2305 = vtanh.f32 %v1064_v16  ;;  %v603_v0 = vpop.permute.xlu1 %602  ;;  %v299_v16 = vmul.f32 %v3108_v4, %v4324_v61 }
 0x13e   :  { %v2292_v13 = vpop.eup %2291  ;;  %2307 = vtanh.f32 %v1061_v30  ;;  %v727_v41 = vmul.f32 %v3117_v22, %v603_v0  ;;  %v728_v53 = vmul.f32 %v3119_v51, %v603_v0  ;;  %v297_v0 = vmul.f32 %v3108_v4, %v4325_v19 }
 0x13f   :  { %2268 = vset.pattern.permute.xlu1 %v4300_v60  ;;  %v2294_v17 = vpop.eup %2293  ;;  %2309 = vtanh.f32 %v1062_v35  ;;  %v2143_v2 = vpack.c.bf16 %v2292_v13, %v2288_v54  ;;  %v295_v60 = vmul.f32 %v3108_v4, %v2927_v46  ;;  %v300_v54 = vmul.f32 %v3112_v38, %v4324_v61  ;;  %v889_v59 = vpop.permute.xlu0 %888 }
 0x140   :  { %960 = vperm.xlu1 %2268, %v2788_v32   ;;  %v2296_v11 = vpop.eup %2295  ;;  %v2141_v15 = vpack.c.bf16 %v2294_v17, %v2290_v5  ;;  %v791_v10 = vadd.f32 %v727_v41, %v517_v48  ;;  %v792_v34 = vadd.f32 %v728_v53, %v518_v23  ;;  %v1002_v32 = vmul.f32 %v3130_v49, %v877_v25  ;;  %v4326_v53 = vld [vmem:[#allocation24_spill] sm:$0xff] }
 0x141   :  { %v2298_v62 = vpop.eup %2297  ;;  %v607_v8 = vpop.permute.xlu1 %606  ;;  %v519_v47 = vadd.f32 %v4323_v26, %v295_v60  ;;  %1366 = vperm.xlu0 %2269, %v1256_v42   ;;  %v298_v13 = vmul.f32 %v3112_v38, %v4325_v19  ;;  %v523_v25 = vadd.f32 %v4326_v53, %v299_v16  ;;  %v524_v17 = vadd.f32 %v4326_v53, %v300_v54  ;;  %v1260_v23 = vld [vmem:[%s4230_s4 + $0xb8] sm:$0xff]  ;;  %v1243_v42 = vld [vmem:[%s4230_s4 + $0x30] sm:$0xff] }
 0x142   :  { %v2300_v63 = vpop.eup %2299  ;;  %2142 = vmatprep.subr.bf16.mxu0 %v2141_v15  ;;  %v729_v56 = vmul.f32 %v3117_v22, %v607_v8  ;;  %v730_v27 = vmul.f32 %v3119_v51, %v607_v8  ;;  %2199 = vmatprep.subr.bf16.mxu1 %v2141_v15  ;;  %v1065_v50 = vadd.f32 %v1001_v36, %v791_v10  ;;  %v4327_v36 = vld [vmem:[#allocation43_spill] sm:$0xff] }
 0x143   :  { %v2302_v31 = vpop.eup %2301  ;;  %2144 = vmatpush1.bf16.msra.mxu0 %v2143_v2  ;;  %v2147_v46 = vpack.c.bf16 %v2296_v11, %v2300_v63  ;;  %2215 = vmatpush1.bf16.msra.mxu1 %v2143_v2  ;;  %v1066_v43 = vadd.f32 %v1002_v32, %v792_v34  ;;  %v1007_v2 = vmul.f32 %v3125_v1, %v889_v59  ;;  %v1241_v11 = vld [vmem:[%s4230_s4 + $0x20] sm:$0xff] }
 0x144   :  { %v2145_v55 = vpack.c.bf16 %v2298_v62, %v2302_v31  ;;  %2270 = vset.pattern.permute.xlu1 %v4322_v24  ;;  %v793_v18 = vadd.f32 %v729_v56, %v519_v47  ;;  %v794_v57 = vadd.f32 %v730_v27, %v520_v7  ;;  %2311 = vtanh.f32 %v1065_v50  ;;  %v4328_v34 = vld [vmem:[#allocation25_spill] sm:$0xff]  ;;  %v1174_v7 = vld [vmem:[%s4229_s3 + $0x8] sm:$0xff] }
 0x145   :  { %1276 = vperm.xlu1 %2270, %v1238_v9   ;;  %1376 = vperm.xlu0 %2269, %v1258_v40   ;;  %2313 = vtanh.f32 %v1066_v43  ;;  %v1008_v10 = vmul.f32 %v3130_v49, %v889_v59  ;;  %v731_v8 = vmul.f32 %v3117_v22, %v4327_v36  ;;  %v732_v63 = vmul.f32 %v3119_v51, %v4327_v36  ;;  %v1750_v31 = vld [vmem:[%s4231_s5] sm:$0xff]  ;;  %v1206_v50 = vld [vmem:[%s4229_s3 + $0x108] sm:$0xff]  ;;  %v893_v59 = vpop.permute.xlu0 %892 }
 0x146   :  { %v2304_v58 = vpop.eup %2303  ;;  %2146 = vmatprep.subr.bf16.mxu0 %v2145_v55  ;;  %2200 = vmatprep.subr.bf16.mxu1 %v2145_v55  ;;  %v881_v21 = vpop.permute.xlu1 %880  ;;  %v521_v32 = vadd.f32 %v4328_v34, %v297_v0  ;;  %v522_v9 = vadd.f32 %v4328_v34, %v298_v13  ;;  %v4329_v43 = vld [vmem:[#allocation9_spill] sm:$0xff]  ;;  %v1247_v0 = vld [vmem:[%s4230_s4 + $0x50] sm:$0xff] }
 0x147   :  { %v2306_v12 = vpop.eup %2305  ;;  %v1003_v33 = vmul.f32 %v3125_v1, %v881_v21  ;;  %v1004_v39 = vmul.f32 %v3130_v49, %v881_v21  ;;  %2148 = vmatpush1.bf16.msra.mxu0 %v2147_v46  ;;  %2216 = vmatpush1.bf16.msra.mxu1 %v2147_v46  ;;  %v301_v21 = vmul.f32 %v3108_v4, %v4329_v43  ;;  %v1756_v34 = vld [vmem:[%s4231_s5 + $0x30] sm:$0xff] }
 0x148   :  { %v2308_v3 = vpop.eup %2307  ;;  %v795_v55 = vadd.f32 %v731_v8, %v521_v32  ;;  %v796_v24 = vadd.f32 %v732_v63, %v522_v9  ;;  %1493 = vmatprep.mubr.f32.mxu0 %v1174_v7  ;;  %1589 = vmatprep.mubr.f32.mxu1 %v1206_v50  ;;  %v4332_v8 = vld [vmem:[#allocation26_spill] sm:$0xff] }
 0x149   :  { %v2310_v30 = vpop.eup %2309  ;;  %v1067_v35 = vadd.f32 %v1003_v33, %v793_v18  ;;  %v1068_v37 = vadd.f32 %v1004_v39, %v794_v57  ;;  %v2151_v5 = vpack.c.bf16 %v2304_v58, %v2308_v3  ;;  %1281 = vperm.xlu1 %2270, %v1239_v6   ;;  %1386 = vperm.xlu0 %2269, %v1260_v23   ;;  %v1752_v18 = vld [vmem:[%s4231_s5 + $0x10] sm:$0xff] }
 0x14a   :  { %v2149_v41 = vpack.c.bf16 %v2306_v12, %v2310_v30  ;;  %v1245_v12 = vld [vmem:[%s4230_s4 + $0x40] sm:$0xff]  ;;  %v302_v33 = vmul.f32 %v3112_v38, %v4329_v43 }
 0x14b   :  { %2315 = vtanh.f32 %v1067_v35  ;;  %v615_v48 = vpop.permute.xlu1 %614  ;;  %v4330_v35 = vld [vmem:[#allocation27_spill] sm:$0xff] }
 0x14c   :  { %2317 = vtanh.f32 %v1068_v37  ;;  %2150 = vmatprep.subr.bf16.mxu0 %v2149_v41  ;;  %2201 = vmatprep.subr.bf16.mxu1 %v2149_v41  ;;  %v733_v15 = vmul.f32 %v3117_v22, %v615_v48  ;;  %v734_v62 = vmul.f32 %v3119_v51, %v615_v48  ;;  %v525_v37 = vadd.f32 %v4330_v35, %v301_v21 }
 0x14d   :  { %2152 = vmatpush1.bf16.msra.mxu0 %v2151_v5  ;;  %2217 = vmatpush1.bf16.msra.mxu1 %v2151_v5  ;;  %v526_v19 = vadd.f32 %v4330_v35, %v302_v33  ;;  %v1009_v41 = vmul.f32 %v3125_v1, %v893_v59  ;;  %v1251_v33 = vld [vmem:[%s4230_s4 + $0x70] sm:$0xff] }
 0x14e   :  { %v797_v60 = vadd.f32 %v733_v15, %v523_v25  ;;  %v798_v20 = vadd.f32 %v734_v62, %v524_v17  ;;  %1291 = vperm.xlu1 %2270, %v1241_v11   ;;  %1784 = vperm.xlu0 %2269, %v1750_v31   ;;  %v2312_v58 = vpop.eup %2311  ;;  %v1754_v25 = vld [vmem:[%s4231_s5 + $0x20] sm:$0xff]  ;;  %v4331_v17 = vld [vmem:[#allocation8_spill] sm:$0xff]  ;;  %v1010_v11 = vmul.f32 %v3130_v49, %v893_v59 }
 0x14f   :  { %v2314_v57 = vpop.eup %2313  ;;  %v303_v48 = vmul.f32 %v3108_v4, %v4331_v17  ;;  %v304_v23 = vmul.f32 %v3112_v38, %v4331_v17  ;;  %v1760_v17 = vld [vmem:[%s4231_s5 + $0x50] sm:$0xff] }
 0x150   :  { %v1071_v56 = vadd.f32 %v1007_v2, %v797_v60  ;;  %v1072_v27 = vadd.f32 %v1008_v10, %v798_v20  ;;  %v885_v46 = vpop.permute.xlu1 %884  ;;  %v1249_v10 = vld [vmem:[%s4230_s4 + $0x60] sm:$0xff] }
 0x151   :  { %v1005_v26 = vmul.f32 %v3125_v1, %v885_v46  ;;  %v1006_v47 = vmul.f32 %v3130_v49, %v885_v46  ;;  %v527_v63 = vadd.f32 %v4332_v8, %v303_v48  ;;  %v528_v60 = vadd.f32 %v4332_v8, %v304_v23  ;;  %v1255_v8 = vld [vmem:[%s4230_s4 + $0x90] sm:$0xff] }
 0x152   :  { %1301 = vperm.xlu1 %2270, %v1243_v42   ;;  %2319 = vtanh.f32 %v1071_v56  ;;  %1794 = vperm.xlu0 %2269, %v1752_v18   ;;  %v4335_v18 = vld [vmem:[#allocation28_spill] sm:$0xff] }
 0x153   :  { %v1069_v6 = vadd.f32 %v1005_v26, %v795_v55  ;;  %v1070_v40 = vadd.f32 %v1006_v47, %v796_v24  ;;  %2321 = vtanh.f32 %v1072_v27  ;;  %v4333_v26 = vld [vmem:[#allocation10_spill] sm:$0xff] }
 0x154   :  { %v307_v47 = vmul.f32 %v3108_v4, %v4333_v26  ;;  %v308_v7 = vmul.f32 %v3112_v38, %v4333_v26 }
 0x155   :  { %v2316_v39 = vpop.eup %2315  ;;  %2323 = vtanh.f32 %v1069_v6  ;;  %v619_v3 = vpop.permute.xlu1 %618 }
 0x156   :  { %v2318_v61 = vpop.eup %2317  ;;  %2325 = vtanh.f32 %v1070_v40  ;;  %v735_v16 = vmul.f32 %v3117_v22, %v619_v3  ;;  %v736_v54 = vmul.f32 %v3119_v51, %v619_v3  ;;  %v2155_v30 = vpack.c.bf16 %v2316_v39, %v2312_v58  ;;  %1311 = vperm.xlu1 %2270, %v1245_v12   ;;  %1804 = vperm.xlu0 %2269, %v1754_v25   ;;  %v905_v58 = vpop.permute.xlu0 %904  ;;  %v4334_v40 = vld [vmem:[#allocation11_spill] sm:$0xff]  ;;  %v1758_v39 = vld [vmem:[%s4231_s5 + $0x40] sm:$0xff] }
 0x157   :  { %v2153_v5 = vpack.c.bf16 %v2318_v61, %v2314_v57  ;;  %v305_v12 = vmul.f32 %v3108_v4, %v4334_v40  ;;  %v531_v57 = vadd.f32 %v4335_v18, %v307_v47  ;;  %v532_v3 = vadd.f32 %v4335_v18, %v308_v7  ;;  %v4336_v61 = vld [vmem:[#allocation44_spill] sm:$0xff]  ;;  %v1253_v25 = vld [vmem:[%s4230_s4 + $0x80] sm:$0xff]  ;;  %v4339_v7 = vld [vmem:[#allocation31_spill] sm:$0xff] }
 0x158   :  { %v799_v13 = vadd.f32 %v735_v16, %v525_v37  ;;  %v800_v2 = vadd.f32 %v736_v54, %v526_v19  ;;  %v739_v16 = vmul.f32 %v3117_v22, %v4336_v61  ;;  %v1015_v59 = vmul.f32 %v3125_v1, %v905_v58  ;;  %v1764_v18 = vld [vmem:[%s4231_s5 + $0x70] sm:$0xff] }
 0x159   :  { %2154 = vmatprep.subr.bf16.mxu0 %v2153_v5  ;;  %2202 = vmatprep.subr.bf16.mxu1 %v2153_v5  ;;  %v623_v53 = vpop.permute.xlu1 %622  ;;  %v1016_v37 = vmul.f32 %v3130_v49, %v905_v58  ;;  %v306_v5 = vmul.f32 %v3112_v38, %v4334_v40  ;;  %v740_v19 = vmul.f32 %v3119_v51, %v4336_v61 }
 0x15a   :  { %2156 = vmatpush1.bf16.msra.mxu0 %v2155_v30  ;;  %v737_v15 = vmul.f32 %v3117_v22, %v623_v53  ;;  %v738_v62 = vmul.f32 %v3119_v51, %v623_v53  ;;  %2218 = vmatpush1.bf16.msra.mxu1 %v2155_v30  ;;  %v1073_v20 = vadd.f32 %v1009_v41, %v799_v13  ;;  %v909_v26 = vpop.permute.xlu0 %908 }
 0x15b   :  { %1321 = vperm.xlu1 %2270, %v1247_v0   ;;  %v1074_v9 = vadd.f32 %v1010_v11, %v800_v2  ;;  %1814 = vperm.xlu0 %2269, %v1756_v34   ;;  %v4337_v0 = vld [vmem:[#allocation29_spill] sm:$0xff]  ;;  %v1017_v40 = vmul.f32 %v3125_v1, %v909_v26 }
 0x15c   :  { %v2320_v36 = vpop.eup %2319  ;;  %v801_v56 = vadd.f32 %v737_v15, %v527_v63  ;;  %v802_v27 = vadd.f32 %v738_v62, %v528_v60  ;;  %2327 = vtanh.f32 %v1073_v20  ;;  %v529_v13 = vadd.f32 %v4337_v0, %v305_v12  ;;  %v1762_v63 = vld [vmem:[%s4231_s5 + $0x60] sm:$0xff] }
 0x15d   :  { %v2322_v32 = vpop.eup %2321  ;;  %2329 = vtanh.f32 %v1074_v9  ;;  %v530_v48 = vadd.f32 %v4337_v0, %v306_v5  ;;  %v1766_v0 = vld [vmem:[%s4231_s5 + $0x80] sm:$0xff] }
 0x15e   :  { %v897_v42 = vpop.permute.xlu1 %896  ;;  %v803_v2 = vadd.f32 %v739_v16, %v529_v13 }
 0x15f   :  { %v2324_v31 = vpop.eup %2323  ;;  %v1011_v46 = vmul.f32 %v3125_v1, %v897_v42  ;;  %v1012_v55 = vmul.f32 %v3130_v49, %v897_v42  ;;  %1331 = vperm.xlu1 %2270, %v1249_v10   ;;  %1824 = vperm.xlu0 %2269, %v1758_v39   ;;  %v804_v62 = vadd.f32 %v740_v19, %v530_v48  ;;  %v4338_v42 = vld [vmem:[#allocation13_spill] sm:$0xff] }
 0x160   :  { %v2326_v24 = vpop.eup %2325  ;;  %v2159_v50 = vpack.c.bf16 %v2320_v36, %v2324_v31  ;;  %v309_v31 = vmul.f32 %v3108_v4, %v4338_v42 }
 0x161   :  { %v1075_v43 = vadd.f32 %v1011_v46, %v801_v56  ;;  %v1076_v21 = vadd.f32 %v1012_v55, %v802_v27  ;;  %v2157_v6 = vpack.c.bf16 %v2322_v32, %v2326_v24  ;;  %v310_v56 = vmul.f32 %v3112_v38, %v4338_v42 }
 0x163   :  { %2331 = vtanh.f32 %v1075_v43  ;;  %2158 = vmatprep.subr.bf16.mxu0 %v2157_v6  ;;  %2203 = vmatprep.subr.bf16.mxu1 %v2157_v6  ;;  %v631_v54 = vpop.permute.xlu1 %630  ;;  %v534_v43 = vadd.f32 %v4339_v7, %v310_v56 }
 0x164   :  { %2333 = vtanh.f32 %v1076_v21  ;;  %v741_v30 = vmul.f32 %v3117_v22, %v631_v54  ;;  %v742_v35 = vmul.f32 %v3119_v51, %v631_v54  ;;  %2160 = vmatpush1.bf16.msra.mxu0 %v2159_v50  ;;  %2219 = vmatpush1.bf16.msra.mxu1 %v2159_v50  ;;  %v533_v50 = vadd.f32 %v4339_v7, %v309_v31  ;;  %v1257_v21 = vld [vmem:[%s4230_s4 + $0xa0] sm:$0xff]  ;;  %v1751_v7 = vld [vmem:[%s4231_s5 + $0x8] sm:$0xff] }
 0x165   :  { %1341 = vperm.xlu1 %2270, %v1251_v33   ;;  %1834 = vperm.xlu0 %2269, %v1760_v17  }
 0x166   :  { %v805_v41 = vadd.f32 %v741_v30, %v531_v57  ;;  %v806_v53 = vadd.f32 %v742_v35, %v532_v3  ;;  %v2328_v60 = vpop.eup %2327  ;;  %v4340_v57 = vld [vmem:[#allocation12_spill] sm:$0xff]  ;;  %v1018_v3 = vmul.f32 %v3130_v49, %v909_v26  ;;  %v4341_v35 = vld [vmem:[#allocation30_spill] sm:$0xff] }
 0x167   :  { %v2330_v32 = vpop.eup %2329  ;;  %v311_v33 = vmul.f32 %v3108_v4, %v4340_v57  ;;  %v312_v61 = vmul.f32 %v3112_v38, %v4340_v57 }
 0x168   :  { %v1079_v11 = vadd.f32 %v1015_v59, %v805_v41  ;;  %v1080_v23 = vadd.f32 %v1016_v37, %v806_v53  ;;  %v901_v15 = vpop.permute.xlu1 %900  ;;  %v1259_v59 = vld [vmem:[%s4230_s4 + $0xb0] sm:$0xff] }
 0x169   :  { %v1013_v10 = vmul.f32 %v3125_v1, %v901_v15  ;;  %v1014_v36 = vmul.f32 %v3130_v49, %v901_v15  ;;  %1351 = vperm.xlu1 %2270, %v1253_v25   ;;  %1844 = vperm.xlu0 %2269, %v1762_v63   ;;  %v535_v37 = vadd.f32 %v4341_v35, %v311_v33  ;;  %v4342_v15 = vld [vmem:[#allocation14_spill] sm:$0xff] }
 0x16a   :  { %2335 = vtanh.f32 %v1079_v11  ;;  %v536_v5 = vadd.f32 %v4341_v35, %v312_v61 }
 0x16b   :  { %v1077_v20 = vadd.f32 %v1013_v10, %v803_v2  ;;  %v1078_v34 = vadd.f32 %v1014_v36, %v804_v62  ;;  %2337 = vtanh.f32 %v1080_v23  ;;  %v315_v62 = vmul.f32 %v3108_v4, %v4342_v15 }
 0x16c   :  { %v316_v10 = vmul.f32 %v3112_v38, %v4342_v15 }
 0x16d   :  { %v2332_v9 = vpop.eup %2331  ;;  %2339 = vtanh.f32 %v1077_v20  ;;  %v635_v27 = vpop.permute.xlu1 %634  ;;  %1361 = vperm.xlu1 %2270, %v1255_v8   ;;  %1854 = vperm.xlu0 %2269, %v1764_v18   ;;  %v1770_v18 = vld [vmem:[%s4231_s5 + $0xa0] sm:$0xff] }
 0x16e   :  { %v2334_v46 = vpop.eup %2333  ;;  %2341 = vtanh.f32 %v1078_v34  ;;  %v743_v55 = vmul.f32 %v3117_v22, %v635_v27  ;;  %v744_v24 = vmul.f32 %v3119_v51, %v635_v27  ;;  %v2163_v47 = vpack.c.bf16 %v2332_v9, %v2328_v60  ;;  %v921_v20 = vpop.permute.xlu0 %920  ;;  %v1261_v34 = vld [vmem:[%s4230_s4 + $0xc0] sm:$0xff]  ;;  %v4343_v9 = vld [vmem:[#allocation32_spill] sm:$0xff] }
 0x16f   :  { %v2161_v58 = vpack.c.bf16 %v2334_v46, %v2330_v32  ;;  %v1768_v32 = vld [vmem:[%s4231_s5 + $0x90] sm:$0xff]  ;;  %v539_v42 = vadd.f32 %v4343_v9, %v315_v62  ;;  %v540_v31 = vadd.f32 %v4343_v9, %v316_v10  ;;  %v1023_v56 = vmul.f32 %v3125_v1, %v921_v20 }
 0x170   :  { %v807_v6 = vadd.f32 %v743_v55, %v533_v50  ;;  %v808_v39 = vadd.f32 %v744_v24, %v534_v43  ;;  %v1024_v46 = vmul.f32 %v3130_v49, %v921_v20  ;;  %v1769_v50 = vld [vmem:[%s4231_s5 + $0x98] sm:$0xff] }
 0x171   :  { %2162 = vmatprep.subr.bf16.mxu0 %v2161_v58  ;;  %2204 = vmatprep.subr.bf16.mxu1 %v2161_v58  ;;  %v639_v12 = vpop.permute.xlu1 %638  ;;  %v4347_v20 = vld [vmem:[#allocation33_spill] sm:$0xff] }
 0x172   :  { %2164 = vmatpush1.bf16.msra.mxu0 %v2163_v47  ;;  %v745_v16 = vmul.f32 %v3117_v22, %v639_v12  ;;  %v746_v54 = vmul.f32 %v3119_v51, %v639_v12  ;;  %2220 = vmatpush1.bf16.msra.mxu1 %v2163_v47  ;;  %v1081_v19 = vadd.f32 %v1017_v40, %v807_v6  ;;  %v1753_v12 = vld [vmem:[%s4231_s5 + $0x18] sm:$0xff] }
 0x173   :  { %1371 = vperm.xlu1 %2270, %v1257_v21   ;;  %v1082_v41 = vadd.f32 %v1018_v3, %v808_v39  ;;  %1864 = vperm.xlu0 %2269, %v1766_v0  }
 0x174   :  { %v2336_v30 = vpop.eup %2335  ;;  %v809_v17 = vadd.f32 %v745_v16, %v535_v37  ;;  %v810_v48 = vadd.f32 %v746_v54, %v536_v5  ;;  %2343 = vtanh.f32 %v1081_v19  ;;  %v4344_v16 = vld [vmem:[#allocation16_spill] sm:$0xff]  ;;  %v4345_v5 = vld [vmem:[#allocation34_spill] sm:$0xff] }
 0x175   :  { %v2338_v13 = vpop.eup %2337  ;;  %2345 = vtanh.f32 %v1082_v41  ;;  %v317_v54 = vmul.f32 %v3108_v4, %v4344_v16  ;;  %v925_v41 = vpop.permute.xlu0 %924 }
 0x176   :  { %v913_v53 = vpop.permute.xlu1 %912  ;;  %v1026_v15 = vmul.f32 %v3130_v49, %v925_v41 }
 0x177   :  { %v2340_v25 = vpop.eup %2339  ;;  %v1019_v2 = vmul.f32 %v3125_v1, %v913_v53  ;;  %v1020_v11 = vmul.f32 %v3130_v49, %v913_v53  ;;  %1381 = vperm.xlu1 %2270, %v1259_v59   ;;  %1874 = vperm.xlu0 %2269, %v1768_v32   ;;  %v318_v59 = vmul.f32 %v3112_v38, %v4344_v16  ;;  %v1755_v53 = vld [vmem:[%s4231_s5 + $0x28] sm:$0xff] }
 0x178   :  { %v2342_v23 = vpop.eup %2341  ;;  %v2167_v36 = vpack.c.bf16 %v2336_v30, %v2340_v25  ;;  %v541_v19 = vadd.f32 %v4345_v5, %v317_v54  ;;  %v1025_v25 = vmul.f32 %v3125_v1, %v925_v41 }
 0x179   :  { %v1083_v8 = vadd.f32 %v1019_v2, %v809_v17  ;;  %v1084_v63 = vadd.f32 %v1020_v11, %v810_v48  ;;  %v2165_v60 = vpack.c.bf16 %v2338_v13, %v2342_v23  ;;  %v542_v13 = vadd.f32 %v4345_v5, %v318_v59  ;;  %v1771_v2 = vld [vmem:[%s4231_s5 + $0xa8] sm:$0xff]  ;;  %v937_v59 = vpop.permute.xlu0 %936  ;;  %v1774_v5 = vld [vmem:[%s4231_s5 + $0xc0] sm:$0xff] }
 0x17a   :  { %v4346_v11 = vld [vmem:[#allocation15_spill] sm:$0xff] }
 0x17b   :  { %2347 = vtanh.f32 %v1083_v8  ;;  %2166 = vmatprep.subr.bf16.mxu0 %v2165_v60  ;;  %2205 = vmatprep.subr.bf16.mxu1 %v2165_v60  ;;  %v647_v27 = vpop.permute.xlu1 %646  ;;  %v319_v23 = vmul.f32 %v3108_v4, %v4346_v11  ;;  %v320_v10 = vmul.f32 %v3112_v38, %v4346_v11 }
 0x17c   :  { %2349 = vtanh.f32 %v1084_v63  ;;  %v749_v55 = vmul.f32 %v3117_v22, %v647_v27  ;;  %v750_v24 = vmul.f32 %v3119_v51, %v647_v27  ;;  %2168 = vmatpush1.bf16.msra.mxu0 %v2167_v36  ;;  %2221 = vmatpush1.bf16.msra.mxu1 %v2167_v36  ;;  %v1757_v63 = vld [vmem:[%s4231_s5 + $0x38] sm:$0xff] }
 0x17d   :  { %1391 = vperm.xlu1 %2270, %v1261_v34   ;;  %1879 = vperm.xlu0 %2269, %v1769_v50   ;;  %v543_v34 = vadd.f32 %v4347_v20, %v319_v23  ;;  %v544_v32 = vadd.f32 %v4347_v20, %v320_v10  ;;  %v4348_v50 = vld [vmem:[#allocation17_spill] sm:$0xff]  ;;  %v4351_v20 = vld [vmem:[#allocation38_spill] sm:$0xff] }
 0x17e   :  { %v813_v26 = vadd.f32 %v749_v55, %v539_v42  ;;  %v814_v47 = vadd.f32 %v750_v24, %v540_v31  ;;  %v2344_v57 = vpop.eup %2343  ;;  %v1772_v42 = vld [vmem:[%s4231_s5 + $0xb0] sm:$0xff] }
 0x17f   :  { %v2346_v3 = vpop.eup %2345 }
 0x180   :  { %v1087_v58 = vadd.f32 %v1023_v56, %v813_v26  ;;  %v1088_v43 = vadd.f32 %v1024_v46, %v814_v47  ;;  %v917_v21 = vpop.permute.xlu1 %916 }
 0x181   :  { %v1021_v6 = vmul.f32 %v3125_v1, %v917_v21  ;;  %v1022_v40 = vmul.f32 %v3130_v49, %v917_v21  ;;  %1789 = vperm.xlu1 %2270, %v1751_v7   ;;  %1884 = vperm.xlu0 %2269, %v1770_v18   ;;  %v1759_v18 = vld [vmem:[%s4231_s5 + $0x48] sm:$0xff] }
 0x182   :  { %2351 = vtanh.f32 %v1087_v58  ;;  %v323_v58 = vmul.f32 %v3108_v4, %v4348_v50 }
 0x183   :  { %v1085_v33 = vadd.f32 %v1021_v6, %v3253_v29  ;;  %v1086_v39 = vadd.f32 %v1022_v40, %v3255_v45  ;;  %2353 = vtanh.f32 %v1088_v43 }
 0x185   :  { %v2348_v61 = vpop.eup %2347  ;;  %2355 = vtanh.f32 %v1085_v33  ;;  %v651_v30 = vpop.permute.xlu1 %650  ;;  %1799 = vperm.xlu1 %2270, %v1753_v12   ;;  %1889 = vperm.xlu0 %2269, %v1771_v2   ;;  %v324_v12 = vmul.f32 %v3112_v38, %v4348_v50  ;;  %v4349_v33 = vld [vmem:[#allocation35_spill] sm:$0xff] }
 0x186   :  { %v2350_v35 = vpop.eup %2349  ;;  %2357 = vtanh.f32 %v1086_v39  ;;  %v751_v37 = vmul.f32 %v3117_v22, %v651_v30  ;;  %v752_v29 = vmul.f32 %v3119_v51, %v651_v30  ;;  %v2171_v45 = vpack.c.bf16 %v2348_v61, %v2344_v57  ;;  %v1773_v57 = vld [vmem:[%s4231_s5 + $0xb8] sm:$0xff] }
 0x187   :  { %v2169_v0 = vpack.c.bf16 %v2350_v35, %v2346_v3  ;;  %v547_v39 = vadd.f32 %v4349_v33, %v323_v58  ;;  %v548_v61 = vadd.f32 %v4349_v33, %v324_v12  ;;  %v1031_v30 = vmul.f32 %v3125_v1, %v937_v59  ;;  %v1779_v33 = vld [vmem:[%s4231_s5 + $0xe8] sm:$0xff] }
 0x188   :  { %v815_v17 = vadd.f32 %v751_v37, %v541_v19  ;;  %v816_v62 = vadd.f32 %v752_v29, %v542_v13  ;;  %v1032_v35 = vmul.f32 %v3130_v49, %v937_v59 }
 0x189   :  { %2170 = vmatprep.subr.bf16.mxu0 %v2169_v0  ;;  %2206 = vmatprep.subr.bf16.mxu1 %v2169_v0  ;;  %v655_v48 = vpop.permute.xlu1 %654 }
 0x18a   :  { %2172 = vmatpush1.bf16.msra.mxu0 %v2171_v45  ;;  %v753_v36 = vmul.f32 %v3117_v22, %v655_v48  ;;  %v754_v8 = vmul.f32 %v3119_v51, %v655_v48  ;;  %2222 = vmatpush1.bf16.msra.mxu1 %v2171_v45  ;;  %v1089_v9 = vadd.f32 %v1025_v25, %v815_v17  ;;  %v1761_v45 = vld [vmem:[%s4231_s5 + $0x58] sm:$0xff]  ;;  %v1763_v25 = vld [vmem:[%s4231_s5 + $0x68] sm:$0xff] }
 0x18b   :  { %1809 = vperm.xlu1 %2270, %v1755_v53   ;;  %v1090_v56 = vadd.f32 %v1026_v15, %v816_v62  ;;  %1894 = vperm.xlu0 %2269, %v1772_v42   ;;  %v1775_v17 = vld [vmem:[%s4231_s5 + $0xc8] sm:$0xff]  ;;  %v1765_v42 = vld [vmem:[%s4231_s5 + $0x78] sm:$0xff] }
 0x18c   :  { %v2352_v60 = vpop.eup %2351  ;;  %v817_v55 = vadd.f32 %v753_v36, %v543_v34  ;;  %v818_v24 = vadd.f32 %v754_v8, %v544_v32  ;;  %2359 = vtanh.f32 %v1089_v9  ;;  %v4350_v62 = vld [vmem:[#allocation19_spill] sm:$0xff] }
 0x18d   :  { %v2354_v31 = vpop.eup %2353  ;;  %2361 = vtanh.f32 %v1090_v56  ;;  %v325_v10 = vmul.f32 %v3108_v4, %v4350_v62  ;;  %v326_v36 = vmul.f32 %v3112_v38, %v4350_v62 }
 0x18e   :  { %v929_v27 = vpop.permute.xlu1 %928 }
 0x18f   :  { %v2356_v46 = vpop.eup %2355  ;;  %v1027_v26 = vmul.f32 %v3125_v1, %v929_v27  ;;  %v1028_v47 = vmul.f32 %v3130_v49, %v929_v27  ;;  %1819 = vperm.xlu1 %2270, %v1757_v63   ;;  %1899 = vperm.xlu0 %2269, %v1773_v57   ;;  %v549_v34 = vadd.f32 %v4351_v20, %v325_v10  ;;  %v1777_v27 = vld [vmem:[%s4231_s5 + $0xd8] sm:$0xff] }
 0x190   :  { %v2358_v7 = vpop.eup %2357  ;;  %v2175_v43 = vpack.c.bf16 %v2352_v60, %v2356_v46  ;;  %v550_v9 = vadd.f32 %v4351_v20, %v326_v36  ;;  %v4352_v46 = vld [vmem:[#allocation18_spill] sm:$0xff] }
 0x191   :  { %v1091_v21 = vadd.f32 %v1027_v26, %v817_v55  ;;  %v1092_v6 = vadd.f32 %v1028_v47, %v818_v24  ;;  %v2173_v40 = vpack.c.bf16 %v2354_v31, %v2358_v7  ;;  %v327_v55 = vmul.f32 %v3108_v4, %v4352_v46  ;;  %v941_v26 = vpop.permute.xlu0 %940 }
 0x192   :  { %v328_v24 = vmul.f32 %v3112_v38, %v4352_v46  ;;  %v1033_v7 = vmul.f32 %v3125_v1, %v941_v26 }
 0x193   :  { %2363 = vtanh.f32 %v1091_v21  ;;  %2174 = vmatprep.subr.bf16.mxu0 %v2173_v40  ;;  %2207 = vmatprep.subr.bf16.mxu1 %v2173_v40  ;;  %v663_v3 = vpop.permute.xlu1 %662  ;;  %v1767_v21 = vld [vmem:[%s4231_s5 + $0x88] sm:$0xff]  ;;  %v4353_v40 = vld [vmem:[#allocation37_spill] sm:$0xff] }
 0x194   :  { %2365 = vtanh.f32 %v1092_v6  ;;  %v757_v16 = vmul.f32 %v3117_v22, %v663_v3  ;;  %v758_v54 = vmul.f32 %v3119_v51, %v663_v3  ;;  %2176 = vmatpush1.bf16.msra.mxu0 %v2175_v43  ;;  %2223 = vmatpush1.bf16.msra.mxu1 %v2175_v43  ;;  %v1034_v43 = vmul.f32 %v3130_v49, %v941_v26 }
 0x195   :  { %1829 = vperm.xlu1 %2270, %v1759_v18   ;;  %1904 = vperm.xlu0 %2269, %v1774_v5   ;;  %v551_v12 = vadd.f32 %v4353_v40, %v327_v55  ;;  %v552_v18 = vadd.f32 %v4353_v40, %v328_v24  ;;  %v953_v62 = vpop.permute.xlu0 %952  ;;  %v4356_v55 = vld [vmem:[#allocation22_spill] sm:$0xff] }
 0x196   :  { %v821_v37 = vadd.f32 %v757_v16, %v547_v39  ;;  %v822_v29 = vadd.f32 %v758_v54, %v548_v61  ;;  %v2360_v48 = vpop.eup %2359  ;;  %v1039_v10 = vmul.f32 %v3125_v1, %v953_v62  ;;  %v1040_v36 = vmul.f32 %v3130_v49, %v953_v62 }
 0x197   :  { %v2362_v23 = vpop.eup %2361  ;;  %v333_v24 = vmul.f32 %v3108_v4, %v4356_v55  ;;  %v334_v26 = vmul.f32 %v3112_v38, %v4356_v55  ;;  %v1209_v55 = vld [vmem:[%s4229_s3 + $0x120] sm:$0xff] }
 0x198   :  { %v1095_v19 = vadd.f32 %v1031_v30, %v821_v37  ;;  %v1096_v0 = vadd.f32 %v1032_v35, %v822_v29  ;;  %v933_v13 = vpop.permute.xlu1 %932  ;;  %v4354_v29 = vld [vmem:[#allocation20_spill] sm:$0xff] }
 0x199   :  { %v1029_v41 = vmul.f32 %v3125_v1, %v933_v13  ;;  %v1030_v53 = vmul.f32 %v3130_v49, %v933_v13  ;;  %1839 = vperm.xlu1 %2270, %v1761_v45   ;;  %1909 = vperm.xlu0 %2269, %v1775_v17   ;;  %v331_v45 = vmul.f32 %v3108_v4, %v4354_v29  ;;  %v4355_v17 = vld [vmem:[#allocation40_spill] sm:$0xff]  ;;  %v957_v40 = vpop.permute.xlu0 %956 }
 0x19a   :  { %2367 = vtanh.f32 %v1095_v19 }
 0x19b   :  { %v1093_v2 = vadd.f32 %v1029_v41, %v3274_v44  ;;  %v1094_v11 = vadd.f32 %v1030_v53, %v3276_v28  ;;  %2369 = vtanh.f32 %v1096_v0  ;;  %v332_v41 = vmul.f32 %v3112_v38, %v4354_v29  ;;  %v1262_v53 = vld [vmem:[%s4230_s4 + $0xc8] sm:$0xff] }
 0x19d   :  { %v2364_v15 = vpop.eup %2363  ;;  %2371 = vtanh.f32 %v1093_v2  ;;  %v667_v8 = vpop.permute.xlu1 %666  ;;  %1849 = vperm.xlu1 %2270, %v1763_v25   ;;  %1919 = vperm.xlu0 %2269, %v1777_v27   ;;  %v1781_v25 = vld [vmem:[%s4231_s5 + $0xf8] sm:$0xff] }
 0x19e   :  { %v2366_v63 = vpop.eup %2365  ;;  %2373 = vtanh.f32 %v1094_v11  ;;  %v759_v60 = vmul.f32 %v3117_v22, %v667_v8  ;;  %v760_v44 = vmul.f32 %v3119_v51, %v667_v8  ;;  %v2179_v28 = vpack.c.bf16 %v2364_v15, %v2360_v48 }
 0x19f   :  { %v2177_v32 = vpack.c.bf16 %v2366_v63, %v2362_v23  ;;  %v555_v48 = vadd.f32 %v4355_v17, %v331_v45  ;;  %v556_v11 = vadd.f32 %v4355_v17, %v332_v41 }
 0x1a0   :  { %v823_v31 = vadd.f32 %v759_v60, %v549_v34  ;;  %v824_v47 = vadd.f32 %v760_v44, %v550_v9  ;;  %v1263_v60 = vld [vmem:[%s4230_s4 + $0xd0] sm:$0xff]  ;;  %v1264_v9 = vld [vmem:[%s4230_s4 + $0xd8] sm:$0xff] }
 0x1a1   :  { %2178 = vmatprep.subr.bf16.mxu0 %v2177_v32  ;;  %2208 = vmatprep.subr.bf16.mxu1 %v2177_v32 }
 0x1a2   :  { %v671_v56 = vpop.permute.xlu1 %670  ;;  %2180 = vmatpush1.bf16.msra.mxu0 %v2179_v28  ;;  %2224 = vmatpush1.bf16.msra.mxu1 %v2179_v28  ;;  %v1097_v57 = vadd.f32 %v1033_v7, %v823_v31  ;;  %v1098_v3 = vadd.f32 %v1034_v43, %v824_v47 }
 0x1a3   :  { %v761_v50 = vmul.f32 %v3117_v22, %v671_v56  ;;  %v762_v58 = vmul.f32 %v3119_v51, %v671_v56  ;;  %1859 = vperm.xlu1 %2270, %v1765_v42   ;;  %1929 = vperm.xlu0 %2269, %v1779_v33   ;;  %v4358_v33 = vld [vmem:[#allocation21_spill] sm:$0xff] }
 0x1a4   :  { %v2368_v6 = vpop.eup %2367  ;;  %2375 = vtanh.f32 %v1097_v57 }
 0x1a5   :  { %v2370_v39 = vpop.eup %2369  ;;  %v825_v54 = vadd.f32 %v761_v50, %v551_v12  ;;  %v826_v59 = vadd.f32 %v762_v58, %v552_v18  ;;  %2377 = vtanh.f32 %v1098_v3  ;;  %v1265_v12 = vld [vmem:[%s4230_s4 + $0xe0] sm:$0xff]  ;;  %v336_v3 = vmul.f32 %v3112_v38, %v4358_v33 }
 0x1a7   :  { %v945_v61 = vpop.permute.xlu1 %944  ;;  %v2372_v16 = vpop.eup %2371  ;;  %1869 = vperm.xlu1 %2270, %v1767_v21   ;;  %1939 = vperm.xlu0 %2269, %v1781_v25  }
 0x1a8   :  { %v1035_v30 = vmul.f32 %v3125_v1, %v945_v61  ;;  %v1036_v35 = vmul.f32 %v3130_v49, %v945_v61  ;;  %v2374_v37 = vpop.eup %2373  ;;  %v2183_v5 = vpack.c.bf16 %v2368_v6, %v2372_v16  ;;  %v1041_v16 = vmul.f32 %v3125_v1, %v957_v40 }
 0x1a9   :  { %v2181_v13 = vpack.c.bf16 %v2370_v39, %v2374_v37  ;;  %v335_v39 = vmul.f32 %v3108_v4, %v4358_v33  ;;  %v4359_v37 = vld [vmem:[#allocation41_spill] sm:$0xff] }
 0x1aa   :  { %v1099_v19 = vadd.f32 %v1035_v30, %v825_v54  ;;  %v1100_v0 = vadd.f32 %v1036_v35, %v826_v59  ;;  %v1042_v30 = vmul.f32 %v3130_v49, %v957_v40  ;;  %v1266_v35 = vld [vmem:[%s4230_s4 + $0xe8] sm:$0xff]  ;;  %v560_v38 = vadd.f32 %v4359_v37, %v336_v3  ;;  %v1215_v40 = vld [vmem:[%s4229_s3 + $0x150] sm:$0xff]  ;;  %v1217_v33 = vld [vmem:[%s4229_s3 + $0x160] sm:$0xff] }
 0x1ab   :  { %2182 = vmatprep.subr.bf16.mxu0 %v2181_v13  ;;  %2209 = vmatprep.subr.bf16.mxu1 %v2181_v13  ;;  %v559_v29 = vadd.f32 %v4359_v37, %v335_v39  ;;  %v1188_v39 = vld [vmem:[%s4229_s3 + $0x78] sm:$0xff] }
 0x1ac   :  { %2379 = vtanh.f32 %v1099_v19  ;;  %v679_v2 = vpop.permute.xlu1 %678  ;;  %2184 = vmatpush1.bf16.msra.mxu0 %v2183_v5  ;;  %2225 = vmatpush1.bf16.msra.mxu1 %v2183_v5  ;;  %v1220_v3 = vld [vmem:[%s4229_s3 + $0x178] sm:$0xff] }
 0x1ad   :  { %2381 = vtanh.f32 %v1100_v0  ;;  %v765_v23 = vmul.f32 %v3117_v22, %v679_v2  ;;  %v766_v15 = vmul.f32 %v3119_v51, %v679_v2  ;;  %1396 = vperm.xlu1 %2270, %v1262_v53   ;;  %v1224_v37 = vld [vmem:[%s4229_s3 + $0x198] sm:$0xff] }
 0x1ae   :  { %v2376_v42 = vpop.eup %2375 }
 0x1af   :  { %v829_v8 = vadd.f32 %v765_v23, %v555_v48  ;;  %v830_v63 = vadd.f32 %v766_v15, %v556_v11  ;;  %v2378_v27 = vpop.eup %2377  ;;  %v1267_v23 = vld [vmem:[%s4230_s4 + $0xf0] sm:$0xff] }
 0x1b1   :  { %v1103_v44 = vadd.f32 %v1039_v10, %v829_v8  ;;  %v1104_v28 = vadd.f32 %v1040_v36, %v830_v63  ;;  %v949_v20 = vpop.permute.xlu1 %948  ;;  %1401 = vperm.xlu1 %2270, %v1263_v60   ;;  %v1778_v60 = vld [vmem:[%s4231_s5 + $0xe0] sm:$0xff] }
 0x1b2   :  { %v1037_v34 = vmul.f32 %v3125_v1, %v949_v20  ;;  %v1038_v32 = vmul.f32 %v3130_v49, %v949_v20  ;;  %v1176_v20 = vld [vmem:[%s4229_s3 + $0x18] sm:$0xff] }
 0x1b3   :  { %2383 = vtanh.f32 %v1103_v44  ;;  %v1173_v44 = vld [vmem:[%s4229_s3] sm:$0xff] }
 0x1b4   :  { %v1101_v31 = vadd.f32 %v1037_v34, %v3296_v52  ;;  %v1102_v56 = vadd.f32 %v1038_v32, %v3298_v14  ;;  %2385 = vtanh.f32 %v1104_v28  ;;  %v4357_v14 = vld [vmem:[#allocation42_spill] sm:$0xff]  ;;  %v1208_v34 = vld [vmem:[%s4229_s3 + $0x118] sm:$0xff]  ;;  %v1780_v32 = vld [vmem:[%s4231_s5 + $0xf0] sm:$0xff] }
 0x1b5   :  { %1406 = vperm.xlu1 %2270, %v1264_v9   ;;  %v557_v43 = vadd.f32 %v4357_v14, %v333_v24  ;;  %v558_v6 = vadd.f32 %v4357_v14, %v334_v26  ;;  %v1205_v28 = vld [vmem:[%s4229_s3 + $0x100] sm:$0xff]  ;;  %v1175_v9 = vld [vmem:[%s4229_s3 + $0x10] sm:$0xff]  ;;  %v1180_v24 = vld [vmem:[%s4229_s3 + $0x38] sm:$0xff] }
 0x1b6   :  { %v2380_v46 = vpop.eup %2379  ;;  %2387 = vtanh.f32 %v1101_v31  ;;  %v683_v47 = vpop.permute.xlu1 %682  ;;  %v1178_v31 = vld [vmem:[%s4229_s3 + $0x28] sm:$0xff]  ;;  %v1212_v26 = vld [vmem:[%s4229_s3 + $0x138] sm:$0xff]  ;;  %v1213_v14 = vld [vmem:[%s4229_s3 + $0x140] sm:$0xff] }
 0x1b7   :  { %v2382_v7 = vpop.eup %2381  ;;  %2389 = vtanh.f32 %v1102_v56  ;;  %v767_v50 = vmul.f32 %v3117_v22, %v683_v47  ;;  %v768_v52 = vmul.f32 %v3119_v51, %v683_v47  ;;  %v2187_v58 = vpack.c.bf16 %v2380_v46, %v2376_v42  ;;  %v1207_v42 = vld [vmem:[%s4229_s3 + $0x110] sm:$0xff]  ;;  %v1210_v56 = vld [vmem:[%s4229_s3 + $0x128] sm:$0xff]  ;;  %v1177_v46 = vld [vmem:[%s4229_s3 + $0x20] sm:$0xff] }
 0x1b8   :  { %v2185_v21 = vpack.c.bf16 %v2382_v7, %v2378_v27  ;;  %v2080_v27 = vld [vmem:[#allocation2] sm:$0x1]  ;;  %v1179_v47 = vld [vmem:[%s4229_s3 + $0x30] sm:$0xff] }
 0x1b9   :  { %v831_v18 = vadd.f32 %v767_v50, %v557_v43  ;;  %v832_v61 = vadd.f32 %v768_v52, %v558_v6  ;;  %1411 = vperm.xlu1 %2270, %v1265_v12   ;;  %v1211_v7 = vld [vmem:[%s4229_s3 + $0x130] sm:$0xff]  ;;  %v1182_v50 = vld [vmem:[%s4229_s3 + $0x48] sm:$0xff]  ;;  %v1184_v43 = vld [vmem:[%s4229_s3 + $0x58] sm:$0xff] }
 0x1ba   :  { %2186 = vmatprep.subr.bf16.mxu0 %v2185_v21  ;;  %2210 = vmatprep.subr.bf16.mxu1 %v2185_v21  ;;  %v687_v57 = vpop.permute.xlu1 %686  ;;  %v1214_v52 = vld [vmem:[%s4229_s3 + $0x148] sm:$0xff]  ;;  %v1216_v21 = vld [vmem:[%s4229_s3 + $0x158] sm:$0xff]  ;;  %v1183_v6 = vld [vmem:[%s4229_s3 + $0x50] sm:$0xff] }
 0x1bb   :  { %2188 = vmatpush1.bf16.msra.mxu0 %v2187_v58  ;;  %v769_v54 = vmul.f32 %v3117_v22, %v687_v57  ;;  %v770_v59 = vmul.f32 %v3119_v51, %v687_v57  ;;  %2226 = vmatpush1.bf16.msra.mxu1 %v2187_v58  ;;  %v1105_v45 = vadd.f32 %v1041_v16, %v831_v18  ;;  %v1181_v58 = vld [vmem:[%s4229_s3 + $0x40] sm:$0xff]  ;;  %v1186_v12 = vld [vmem:[%s4229_s3 + $0x68] sm:$0xff]  ;;  %v1219_v16 = vld [vmem:[%s4229_s3 + $0x170] sm:$0xff] }
 0x1bc   :  { %v1106_v19 = vadd.f32 %v1042_v30, %v832_v61  ;;  %v1218_v18 = vld [vmem:[%s4229_s3 + $0x168] sm:$0xff]  ;;  %v1185_v57 = vld [vmem:[%s4229_s3 + $0x60] sm:$0xff]  ;;  %v1187_v61 = vld [vmem:[%s4229_s3 + $0x70] sm:$0xff] }
 0x1bd   :  { %v2384_v4 = vpop.eup %2383  ;;  %v833_v13 = vadd.f32 %v769_v54, %v559_v29  ;;  %v834_v51 = vadd.f32 %v770_v59, %v560_v38  ;;  %1416 = vperm.xlu1 %2270, %v1266_v35   ;;  %2391 = vtanh.f32 %v1105_v45  ;;  %v1190_v54 = vld [vmem:[%s4229_s3 + $0x88] sm:$0xff]  ;;  %v1189_v30 = vld [vmem:[%s4229_s3 + $0x80] sm:$0xff]  ;;  %v1191_v29 = vld [vmem:[%s4229_s3 + $0x90] sm:$0xff] }
 0x1be   :  { %v2386_v5 = vpop.eup %2385  ;;  %2393 = vtanh.f32 %v1106_v19  ;;  %v1222_v59 = vld [vmem:[%s4229_s3 + $0x188] sm:$0xff]  ;;  %v1221_v35 = vld [vmem:[%s4229_s3 + $0x180] sm:$0xff]  ;;  %v1223_v38 = vld [vmem:[%s4229_s3 + $0x190] sm:$0xff] }
 0x1bf   :  { %v961_v0 = vpop.permute.xlu1 %960  ;;  %v1194_v45 = vld [vmem:[%s4229_s3 + $0xa8] sm:$0xff]  ;;  %v1193_v19 = vld [vmem:[%s4229_s3 + $0xa0] sm:$0xff] }
 0x1c0   :  { %v2388_v22 = vpop.eup %2387  ;;  %v1043_v41 = vmul.f32 %v3125_v1, %v961_v0  ;;  %v1044_v53 = vmul.f32 %v3130_v49, %v961_v0  ;;  %v1268_v1 = vld [vmem:[%s4230_s4 + $0xf8] sm:$0xff]  ;;  %v1776_v49 = vld [vmem:[%s4231_s5 + $0xd0] sm:$0xff]  ;;  %v1225_v0 = vld [vmem:[%s4229_s3 + $0x1a0] sm:$0xff] }
 0x1c1   :  { %v2390_v25 = vpop.eup %2389  ;;  %v2191_v17 = vpack.c.bf16 %v2384_v4, %v2388_v22  ;;  %1421 = vperm.xlu1 %2270, %v1267_v23   ;;  %v1192_v4 = vld [vmem:[%s4229_s3 + $0x98] sm:$0xff]  ;;  %v1199_v23 = vld [vmem:[%s4229_s3 + $0xd0] sm:$0xff] }
 0x1c2   :  { %v1107_v48 = vadd.f32 %v1043_v41, %v833_v13  ;;  %v1108_v2 = vadd.f32 %v1044_v53, %v834_v51  ;;  %v2189_v11 = vpack.c.bf16 %v2386_v5, %v2390_v25  ;;  %v1226_v5 = vld [vmem:[%s4229_s3 + $0x1a8] sm:$0xff]  ;;  %v1196_v22 = vld [vmem:[%s4229_s3 + $0xb8] sm:$0xff]  ;;  %v1195_v51 = vld [vmem:[%s4229_s3 + $0xb0] sm:$0xff] }
 0x1c3   :  { %v1228_v13 = vld [vmem:[%s4229_s3 + $0x1b8] sm:$0xff]  ;;  %v1227_v41 = vld [vmem:[%s4229_s3 + $0x1b0] sm:$0xff]  ;;  %v1198_v53 = vld [vmem:[%s4229_s3 + $0xc8] sm:$0xff] }
 0x1c4   :  { %2395 = vtanh.f32 %v1107_v48  ;;  %2190 = vmatprep.subr.bf16.mxu0 %v2189_v11  ;;  %2211 = vmatprep.subr.bf16.mxu1 %v2189_v11  ;;  %v1230_v25 = vld [vmem:[%s4229_s3 + $0x1c8] sm:$0xff]  ;;  %v1229_v48 = vld [vmem:[%s4229_s3 + $0x1c0] sm:$0xff]  ;;  %v1232_v11 = vld [vmem:[%s4229_s3 + $0x1d8] sm:$0xff] }
 0x1c5   :  { %2397 = vtanh.f32 %v1108_v2  ;;  %2192 = vmatpush1.bf16.msra.mxu0 %v2191_v17  ;;  %2227 = vmatpush1.bf16.msra.mxu1 %v2191_v17  ;;  %v1197_v17 = vld [vmem:[%s4229_s3 + $0xc0] sm:$0xff]  ;;  %v1200_v2 = vld [vmem:[%s4229_s3 + $0xd8] sm:$0xff] }
 0x1c6   :  { %1426 = vperm.xlu1 %2270, %v1268_v1   ;;  %v1231_v1 = vld [vmem:[%s4229_s3 + $0x1d0] sm:$0xff] }
 0x1c7   :  { %v2392_v15 = vpop.eup %2391 }
 0x1c8   :  { %v2394_v62 = vpop.eup %2393 }
 0x1ca   :  { %1914 = vperm.xlu1 %2270, %v1776_v49   ;;  %v1202_v49 = vld [vmem:[%s4229_s3 + $0xe8] sm:$0xff] }
 0x1ce   :  { %v2396_v10 = vpop.eup %2395  ;;  %1924 = vperm.xlu1 %2270, %v1778_v60   ;;  %v1235_v60 = vld [vmem:[%s4229_s3 + $0x1f0] sm:$0xff] }
 0x1cf   :  { %v2398_v36 = vpop.eup %2397  ;;  %v2195_v8 = vpack.c.bf16 %v2396_v10, %v2392_v15  ;;  %v1234_v15 = vld [vmem:[%s4229_s3 + $0x1e8] sm:$0xff]  ;;  %v1233_v10 = vld [vmem:[%s4229_s3 + $0x1e0] sm:$0xff] }
 0x1d0   :  { %v2193_v63 = vpack.c.bf16 %v2398_v36, %v2394_v62  ;;  %v1201_v62 = vld [vmem:[%s4229_s3 + $0xe0] sm:$0xff]  ;;  %v1204_v36 = vld [vmem:[%s4229_s3 + $0xf8] sm:$0xff] }
 0x1d2   :  { %2194 = vmatprep.subr.bf16.mxu0 %v2193_v63  ;;  %2212 = vmatprep.subr.bf16.mxu1 %v2193_v63  ;;  %v1203_v63 = vld [vmem:[%s4229_s3 + $0xf0] sm:$0xff] }
 0x1d3   :  { %2196 = vmatpush1.bf16.msra.mxu0 %v2195_v8  ;;  %2228 = vmatpush1.bf16.msra.mxu1 %v2195_v8  ;;  %v1236_v8 = vld [vmem:[%s4229_s3 + $0x1f8] sm:$0xff]  ;;  %s2559_s3 = smov [#allocation3]  }
 0x1d4   :  { %1934 = vperm.xlu1 %2270, %v1780_v32   ;;  %s2125_s11 = sshll.u32 %s2559_s3, 4  ;;  %s2126_s11 = int_to_ptr.vmem [resolvable:$true] %s2125_s11 }
 0x1d5   :  { %s2531_s12 = scalar_lea.vmem %s2126_s11, 32  ;;  %p2536_p1 = scmp.lt.s32.totalorder %s2126_s11, %s2126_s11 }
 0x1d6   :  { %1494 = vmatmul.mubr.f32.vlgmr.msra.gmra.mrb[0].mxu0 %v1173_v44  ;;  %1590 = vmatmul.mubr.f32.vlgmr.msra.gmra.mrb[0].mxu1 %v1205_v28  ;;  %v1277_v44 = vpop.permute.xlu1 %1276  ;;  %v1272_v28 = vpop.permute.xlu0 %1271  ;;  %p2532_p0 = scmp.ne.s32.totalorder %s2126_s11, %s2531_s12  ;;  %p2537_p2 = scmp.lt.s32.totalorder %s2531_s12, %s2531_s12 }
 0x1d7   :  { %1499 = vmatprep.mubr.f32.mxu0 %v1176_v20  ;;  %1595 = vmatprep.mubr.f32.mxu1 %v1208_v34 }
 0x1d8   :  { %2083 = vperm.xlu1 %2270, %v2080_v27   ;;  %p2538_p3 = por %p2537_p2, %p2536_p1 }
 0x1da   :  { %1500 = vmatmul.mubr.f32.gmra.mrb[2].mxu0 %v1175_v9  ;;  %1596 = vmatmul.mubr.f32.gmra.mrb[2].mxu1 %v1207_v42  ;;  %v1282_v20 = vpop.permute.xlu1 %1281  ;;  %v3915_v34 = vpop.permute.xlu0 %1286  ;;  %p2539_p4 = pnand %p2538_p3, %p2532_p0 }
 0x1db   :  { %1505 = vmatprep.mubr.f32.mxu0 %v1178_v31  ;;  %1601 = vmatprep.mubr.f32.mxu1 %v1210_v56 }
 0x1de   :  { %1506 = vmatmul.mubr.f32.gmra.mrb[4].mxu0 %v1177_v46  ;;  %1602 = vmatmul.mubr.f32.gmra.mrb[4].mxu1 %v1209_v55  ;;  %v3917_v32 = vpop.permute.xlu1 %1291  ;;  %v3919_v9 = vpop.permute.xlu0 %1296 }
 0x1df   :  { %1511 = vmatprep.mubr.f32.mxu0 %v1180_v24  ;;  %1607 = vmatprep.mubr.f32.mxu1 %v1212_v26 }
 0x1e2   :  { %1512 = vmatmul.mubr.f32.gmra.mrb[6].mxu0 %v1179_v47  ;;  %1608 = vmatmul.mubr.f32.gmra.mrb[6].mxu1 %v1211_v7  ;;  %v3921_v42 = vpop.permute.xlu1 %1301  ;;  %v3923_v31 = vpop.permute.xlu0 %1306 }
 0x1e3   :  { %1517 = vmatprep.mubr.f32.mxu0 %v1182_v50  ;;  %1613 = vmatprep.mubr.f32.mxu1 %v1214_v52 }
 0x1e6   :  { %1518 = vmatmul.mubr.f32.gmra.mrb[8].mxu0 %v1181_v58  ;;  %1614 = vmatmul.mubr.f32.gmra.mrb[8].mxu1 %v1213_v14  ;;  %v3925_v56 = vpop.permute.xlu1 %1311  ;;  %v3927_v27 = vpop.permute.xlu0 %1316 }
 0x1e7   :  { %1523 = vmatprep.mubr.f32.mxu0 %v1184_v43  ;;  %1619 = vmatprep.mubr.f32.mxu1 %v1216_v21 }
 0x1ea   :  { %1524 = vmatmul.mubr.f32.gmra.mrb[10].mxu0 %v1183_v6  ;;  %1620 = vmatmul.mubr.f32.gmra.mrb[10].mxu1 %v1215_v40  ;;  %v3929_v46 = vpop.permute.xlu1 %1321  ;;  %v3931_v55 = vpop.permute.xlu0 %1326 }
 0x1eb   :  { %1529 = vmatprep.mubr.f32.mxu0 %v1186_v12  ;;  %1625 = vmatprep.mubr.f32.mxu1 %v1218_v18 }
 0x1ee   :  { %1530 = vmatmul.mubr.f32.gmra.mrb[12].mxu0 %v1185_v57  ;;  %1626 = vmatmul.mubr.f32.gmra.mrb[12].mxu1 %v1217_v33  ;;  %v3933_v24 = vpop.permute.xlu1 %1331  ;;  %v3935_v26 = vpop.permute.xlu0 %1336 }
 0x1ef   :  { %1535 = vmatprep.mubr.f32.mxu0 %v1188_v39  ;;  %1631 = vmatprep.mubr.f32.mxu1 %v1220_v3 }
 0x1f2   :  { %1536 = vmatmul.mubr.f32.gmra.mrb[14].mxu0 %v1187_v61  ;;  %1632 = vmatmul.mubr.f32.gmra.mrb[14].mxu1 %v1219_v16  ;;  %v3937_v47 = vpop.permute.xlu1 %1341  ;;  %v3939_v7 = vpop.permute.xlu0 %1346 }
 0x1f3   :  { %1541 = vmatprep.mubr.f32.mxu0 %v1190_v54  ;;  %1637 = vmatprep.mubr.f32.mxu1 %v1222_v59 }
 0x1f6   :  { %1542 = vmatmul.mubr.f32.gmra.mrb[16].mxu0 %v1189_v30  ;;  %1638 = vmatmul.mubr.f32.gmra.mrb[16].mxu1 %v1221_v35  ;;  %v3941_v50 = vpop.permute.xlu1 %1351  ;;  %v3943_v52 = vpop.permute.xlu0 %1356 }
 0x1f7   :  { %1547 = vmatprep.mubr.f32.mxu0 %v1192_v4  ;;  %1643 = vmatprep.mubr.f32.mxu1 %v1224_v37 }
 0x1fa   :  { %1548 = vmatmul.mubr.f32.gmra.mrb[18].mxu0 %v1191_v29  ;;  %1644 = vmatmul.mubr.f32.gmra.mrb[18].mxu1 %v1223_v38  ;;  %v3945_v58 = vpop.permute.xlu1 %1361  ;;  %v3947_v14 = vpop.permute.xlu0 %1366 }
 0x1fb   :  { %1553 = vmatprep.mubr.f32.mxu0 %v1194_v45  ;;  %1649 = vmatprep.mubr.f32.mxu1 %v1226_v5 }
 0x1fe   :  { %1554 = vmatmul.mubr.f32.gmra.mrb[20].mxu0 %v1193_v19  ;;  %1650 = vmatmul.mubr.f32.gmra.mrb[20].mxu1 %v1225_v0  ;;  %v3949_v43 = vpop.permute.xlu1 %1371  ;;  %v3951_v21 = vpop.permute.xlu0 %1376 }
 0x1ff   :  { %1559 = vmatprep.mubr.f32.mxu0 %v1196_v22  ;;  %1655 = vmatprep.mubr.f32.mxu1 %v1228_v13 }
 0x202   :  { %1560 = vmatmul.mubr.f32.gmra.mrb[22].mxu0 %v1195_v51  ;;  %1656 = vmatmul.mubr.f32.gmra.mrb[22].mxu1 %v1227_v41  ;;  %v3953_v6 = vpop.permute.xlu1 %1381  ;;  %v3955_v40 = vpop.permute.xlu0 %1386 }
 0x203   :  { %1565 = vmatprep.mubr.f32.mxu0 %v1198_v53  ;;  %1661 = vmatprep.mubr.f32.mxu1 %v1230_v25 }
 0x206   :  { %1566 = vmatmul.mubr.f32.gmra.mrb[24].mxu0 %v1197_v17  ;;  %1662 = vmatmul.mubr.f32.gmra.mrb[24].mxu1 %v1229_v48  ;;  %v3957_v12 = vpop.permute.xlu1 %1391  ;;  %v1785_v18 = vpop.permute.xlu0 %1784 }
 0x207   :  { %1571 = vmatprep.mubr.f32.mxu0 %v1200_v2  ;;  %1667 = vmatprep.mubr.f32.mxu1 %v1232_v11 }
 0x20a   :  { %1572 = vmatmul.mubr.f32.gmra.mrb[26].mxu0 %v1199_v23  ;;  %1668 = vmatmul.mubr.f32.gmra.mrb[26].mxu1 %v1231_v1  ;;  %v1790_v57 = vpop.permute.xlu1 %1789  ;;  %v3959_v33 = vpop.permute.xlu0 %1794 }
 0x20b   :  { %1577 = vmatprep.mubr.f32.mxu0 %v1202_v49  ;;  %1673 = vmatprep.mubr.f32.mxu1 %v1234_v15 }
 0x20e   :  { %1578 = vmatmul.mubr.f32.gmra.mrb[28].mxu0 %v1201_v62  ;;  %1674 = vmatmul.mubr.f32.gmra.mrb[28].mxu1 %v1233_v10  ;;  %v3961_v39 = vpop.permute.xlu1 %1799  ;;  %v3963_v3 = vpop.permute.xlu0 %1804 }
 0x20f   :  { %1583 = vmatprep.mubr.f32.mxu0 %v1204_v36  ;;  %1679 = vmatprep.mubr.f32.mxu1 %v1236_v8 }
 0x212   :  { %1584 = vmatmul.mubr.f32.gmra.mrb[30].mxu0 %v1203_v63  ;;  %1680 = vmatmul.mubr.f32.gmra.mrb[30].mxu1 %v1235_v60  ;;  %v3965_v61 = vpop.permute.xlu1 %1809  ;;  %v3967_v16 = vpop.permute.xlu0 %1814 }
 0x216   :  { %v3969_v54 = vpop.permute.xlu1 %1819  ;;  %v3971_v59 = vpop.permute.xlu0 %1824 }
 0x21a   :  { %v3977_v45 = vpop.permute.xlu1 %1829  ;;  %v3983_v41 = vpop.permute.xlu0 %1834 }
 0x21e   :  { %v3989_v23 = vpop.permute.xlu1 %1839  ;;  %v3997_v63 = vpop.permute.xlu0 %1844 }
 0x2a9   :  { %v1495_v30 = vpop.f32.mrb[0].mxu0  ;;  %v3973_v35 = vpop.f32.mrb[0].mxu1 }
 0x2aa   :  { %v1496_v4 = vadd.f32 %v1495_v30, %v1272_v28  ;;  %v1497_v37 = vpop.f32.mrb[1].mxu0  ;;  %v3975_v29 = vpop.f32.mrb[1].mxu1 }
 0x2ab   :  { %v1498_v38 = vadd.f32 %v1497_v37, %v1272_v28 }
 0x2ac   :  { %2399 = vtanh.f32 %v1496_v4 }
 0x2ad   :  { %v1501_v5 = vpop.f32.mrb[2].mxu0  ;;  %v3979_v19 = vpop.f32.mrb[2].mxu1  ;;  %2401 = vtanh.f32 %v1498_v38 }
 0x2ae   :  { %v1502_v0 = vadd.f32 %v1501_v5, %v1277_v44  ;;  %v1503_v22 = vpop.f32.mrb[3].mxu0  ;;  %v3981_v13 = vpop.f32.mrb[3].mxu1 }
 0x2af   :  { %v1504_v51 = vadd.f32 %v1503_v22, %v1277_v44  ;;  %v4005_v22 = vpop.permute.xlu1 %1849 }
 0x2b0   :  { %2403 = vtanh.f32 %v1502_v0 }
 0x2b1   :  { %v1507_v53 = vpop.f32.mrb[4].mxu0  ;;  %v3985_v25 = vpop.f32.mrb[4].mxu1  ;;  %2405 = vtanh.f32 %v1504_v51 }
 0x2b2   :  { %v1508_v17 = vadd.f32 %v1507_v53, %v1282_v20  ;;  %v1509_v48 = vpop.f32.mrb[5].mxu0  ;;  %v3987_v2 = vpop.f32.mrb[5].mxu1 }
 0x2b3   :  { %v1510_v11 = vadd.f32 %v1509_v48, %v1282_v20 }
 0x2b4   :  { %2407 = vtanh.f32 %v1508_v17 }
 0x2b5   :  { %v1513_v1 = vpop.f32.mrb[6].mxu0  ;;  %v3991_v49 = vpop.f32.mrb[6].mxu1  ;;  %2409 = vtanh.f32 %v1510_v11 }
 0x2b6   :  { %v1514_v15 = vadd.f32 %v1513_v1, %v3915_v34  ;;  %v1515_v62 = vpop.f32.mrb[7].mxu0  ;;  %v3994_v10 = vpop.f32.mrb[7].mxu1 }
 0x2b7   :  { %v1516_v36 = vadd.f32 %v1515_v62, %v3915_v34  ;;  %v2400_v8 = vpop.eup %2399 }
 0x2b8   :  { %2411 = vtanh.f32 %v1514_v15  ;;  %v2402_v60 = vpop.eup %2401  ;;  %v1942_v38 = vmul.f32 %v2400_v8, %v1785_v18 }
 0x2b9   :  { %v1519_v44 = vpop.f32.mrb[8].mxu0  ;;  %v3999_v28 = vpop.f32.mrb[8].mxu1  ;;  %2413 = vtanh.f32 %v1516_v36  ;;  %v1943_v51 = vmul.f32 %v2402_v60, %v1785_v18 }
 0x2ba   :  { %v2404_v20 = vpop.eup %2403  ;;  %v1520_v30 = vadd.f32 %v1519_v44, %v3917_v32  ;;  %v1521_v4 = vpop.f32.mrb[9].mxu0 }
 0x2bb   :  { %v4002_v37 = vpop.f32.mrb[9].mxu1  ;;  %v1944_v5 = vmul.f32 %v2404_v20, %v1790_v57  ;;  %v1522_v0 = vadd.f32 %v1521_v4, %v3917_v32  ;;  %v2406_v34 = vpop.eup %2405 }
 0x2bc   :  { %2415 = vtanh.f32 %v1520_v30  ;;  %v1945_v17 = vmul.f32 %v2406_v34, %v1790_v57  ;;  %v4014_v30 = vpop.permute.xlu0 %1854 }
 0x2bd   :  { %v2006_v53 = vadd.f32 %v1944_v5, %v1942_v38  ;;  %v1525_v48 = vpop.f32.mrb[10].mxu0  ;;  %v4007_v11 = vpop.f32.mrb[10].mxu1  ;;  %2417 = vtanh.f32 %v1522_v0 }
 0x2be   :  { %v2408_v1 = vpop.eup %2407  ;;  %v1526_v15 = vadd.f32 %v1525_v48, %v3919_v9  ;;  %v1527_v62 = vpop.f32.mrb[11].mxu0  ;;  %v2043_v8 = vadd.f32 %v1945_v17, %v1943_v51 }
 0x2bf   :  { %v4010_v36 = vpop.f32.mrb[11].mxu1  ;;  %v1946_v32 = vmul.f32 %v2408_v1, %v3959_v33  ;;  %v1528_v44 = vadd.f32 %v1527_v62, %v3919_v9  ;;  %v2410_v20 = vpop.eup %2409 }
 0x2c0   :  { %2419 = vtanh.f32 %v1526_v15  ;;  %v1947_v57 = vmul.f32 %v2410_v20, %v3959_v33  ;;  %v4024_v1 = vpop.permute.xlu1 %1859 }
 0x2c1   :  { %v2007_v18 = vadd.f32 %v2006_v53, %v1946_v32  ;;  %v1531_v60 = vpop.f32.mrb[12].mxu0  ;;  %v4017_v4 = vpop.f32.mrb[12].mxu1  ;;  %2421 = vtanh.f32 %v1528_v44 }
 0x2c2   :  { %v2412_v38 = vpop.eup %2411  ;;  %v1532_v5 = vadd.f32 %v1531_v60, %v3921_v42  ;;  %v1533_v0 = vpop.f32.mrb[13].mxu0  ;;  %v2044_v51 = vadd.f32 %v2043_v8, %v1947_v57 }
 0x2c3   :  { %v4020_v34 = vpop.f32.mrb[13].mxu1  ;;  %v1948_v9 = vmul.f32 %v2412_v38, %v3961_v39  ;;  %v1534_v17 = vadd.f32 %v1533_v0, %v3921_v42  ;;  %v2414_v48 = vpop.eup %2413 }
 0x2c4   :  { %2423 = vtanh.f32 %v1532_v5  ;;  %v1949_v53 = vmul.f32 %v2414_v48, %v3961_v39  ;;  %v4034_v5 = vpop.permute.xlu0 %1864 }
 0x2c5   :  { %v2008_v33 = vadd.f32 %v2007_v18, %v1948_v9  ;;  %v1537_v15 = vpop.f32.mrb[14].mxu0  ;;  %v4027_v62 = vpop.f32.mrb[14].mxu1  ;;  %2425 = vtanh.f32 %v1534_v17 }
 0x2c6   :  { %v2416_v32 = vpop.eup %2415  ;;  %v1538_v44 = vadd.f32 %v1537_v15, %v3923_v31  ;;  %v1539_v20 = vpop.f32.mrb[15].mxu0  ;;  %v2045_v57 = vadd.f32 %v2044_v51, %v1949_v53 }
 0x2c7   :  { %v4030_v8 = vpop.f32.mrb[15].mxu1  ;;  %v1950_v42 = vmul.f32 %v2416_v32, %v3963_v3  ;;  %v1540_v60 = vadd.f32 %v1539_v20, %v3923_v31  ;;  %v2418_v38 = vpop.eup %2417 }
 0x2c8   :  { %2427 = vtanh.f32 %v1538_v44  ;;  %v1951_v18 = vmul.f32 %v2418_v38, %v3963_v3  ;;  %v4044_v44 = vpop.permute.xlu1 %1869 }
 0x2c9   :  { %v2009_v39 = vadd.f32 %v2008_v33, %v1950_v42  ;;  %v1543_v0 = vpop.f32.mrb[16].mxu0  ;;  %v4037_v9 = vpop.f32.mrb[16].mxu1  ;;  %2429 = vtanh.f32 %v1540_v60 }
 0x2ca   :  { %v2420_v17 = vpop.eup %2419  ;;  %v1544_v48 = vadd.f32 %v1543_v0, %v3925_v56  ;;  %v1545_v15 = vpop.f32.mrb[17].mxu0  ;;  %v2046_v53 = vadd.f32 %v2045_v57, %v1951_v18 }
 0x2cb   :  { %v4040_v51 = vpop.f32.mrb[17].mxu1  ;;  %v1952_v31 = vmul.f32 %v2420_v17, %v3965_v61  ;;  %v1546_v32 = vadd.f32 %v1545_v15, %v3925_v56  ;;  %v2422_v20 = vpop.eup %2421 }
 0x2cc   :  { %4360 = vst [vmem:[#allocation23_spill] sm:$0xff] %v4040_v51  ;;  %2431 = vtanh.f32 %v1544_v48  ;;  %v1953_v33 = vmul.f32 %v2422_v20, %v3965_v61  ;;  %v4054_v48 = vpop.permute.xlu0 %1874 }
 0x2cd   :  { %v2010_v3 = vadd.f32 %v2009_v39, %v1952_v31  ;;  %v1549_v42 = vpop.f32.mrb[18].mxu0  ;;  %v4047_v38 = vpop.f32.mrb[18].mxu1  ;;  %2433 = vtanh.f32 %v1546_v32 }
 0x2ce   :  { %v2424_v60 = vpop.eup %2423  ;;  %v1550_v0 = vadd.f32 %v1549_v42, %v3927_v27  ;;  %v1551_v51 = vpop.f32.mrb[19].mxu0  ;;  %v2047_v18 = vadd.f32 %v2046_v53, %v1953_v33 }
 0x2cf   :  { %v4050_v57 = vpop.f32.mrb[19].mxu1  ;;  %v1954_v56 = vmul.f32 %v2424_v60, %v3967_v16  ;;  %v1552_v17 = vadd.f32 %v1551_v51, %v3927_v27  ;;  %v2426_v15 = vpop.eup %2425 }
 0x2d0   :  { %4361 = vst [vmem:[#allocation6_spill] sm:$0xff] %v4050_v57  ;;  %2435 = vtanh.f32 %v1550_v0  ;;  %v1955_v39 = vmul.f32 %v2426_v15, %v3967_v16  ;;  %v4064_v0 = vpop.permute.xlu1 %1396 }
 0x2d1   :  { %v2011_v61 = vadd.f32 %v2010_v3, %v1954_v56  ;;  %v1555_v31 = vpop.f32.mrb[20].mxu0  ;;  %v4057_v20 = vpop.f32.mrb[20].mxu1  ;;  %2437 = vtanh.f32 %v1552_v17 }
 0x2d2   :  { %v2428_v32 = vpop.eup %2427  ;;  %v1556_v42 = vadd.f32 %v1555_v31, %v3929_v46  ;;  %v1557_v57 = vpop.f32.mrb[21].mxu0  ;;  %v2048_v33 = vadd.f32 %v2047_v18, %v1955_v39 }
 0x2d3   :  { %v4060_v53 = vpop.f32.mrb[21].mxu1  ;;  %v1956_v27 = vmul.f32 %v2428_v32, %v3969_v54  ;;  %v1558_v51 = vadd.f32 %v1557_v57, %v3929_v46  ;;  %v2430_v60 = vpop.eup %2429 }
 0x2d4   :  { %4362 = vst [vmem:[#allocation7_spill] sm:$0xff] %v4060_v53  ;;  %2439 = vtanh.f32 %v1556_v42  ;;  %v1957_v3 = vmul.f32 %v2430_v60, %v3969_v54  ;;  %v4074_v42 = vpop.permute.xlu0 %1879 }
 0x2d5   :  { %v2012_v16 = vadd.f32 %v2011_v61, %v1956_v27  ;;  %v1561_v56 = vpop.f32.mrb[22].mxu0  ;;  %v4067_v15 = vpop.f32.mrb[22].mxu1  ;;  %2441 = vtanh.f32 %v1558_v51 }
 0x2d6   :  { %v2432_v17 = vpop.eup %2431  ;;  %v1562_v31 = vadd.f32 %v1561_v56, %v3931_v55  ;;  %v1563_v53 = vpop.f32.mrb[23].mxu0  ;;  %v2049_v39 = vadd.f32 %v2048_v33, %v1957_v3 }
 0x2d7   :  { %v4070_v18 = vpop.f32.mrb[23].mxu1  ;;  %v1958_v46 = vmul.f32 %v2432_v17, %v3971_v59  ;;  %v1564_v57 = vadd.f32 %v1563_v53, %v3931_v55  ;;  %v2434_v32 = vpop.eup %2433 }
 0x2d8   :  { %4363 = vst [vmem:[#allocation24_spill] sm:$0xff] %v4070_v18  ;;  %2443 = vtanh.f32 %v1562_v31  ;;  %v1959_v61 = vmul.f32 %v2434_v32, %v3971_v59  ;;  %v4084_v31 = vpop.permute.xlu1 %1401  ;;  %v1592_v59 = vadd.f32 %v3973_v35, %v3941_v50 }
 0x2d9   :  { %v2013_v54 = vadd.f32 %v2012_v16, %v1958_v46  ;;  %v1567_v27 = vpop.f32.mrb[24].mxu0  ;;  %v4077_v60 = vpop.f32.mrb[24].mxu1  ;;  %2445 = vtanh.f32 %v1564_v57 }
 0x2da   :  { %v2436_v51 = vpop.eup %2435  ;;  %v1568_v56 = vadd.f32 %v1567_v27, %v3933_v24  ;;  %v1569_v18 = vpop.f32.mrb[25].mxu0  ;;  %v2050_v3 = vadd.f32 %v2049_v39, %v1959_v61 }
 0x2db   :  { %v4080_v33 = vpop.f32.mrb[25].mxu1  ;;  %v1960_v55 = vmul.f32 %v2436_v51, %v3977_v45  ;;  %v1570_v53 = vadd.f32 %v1569_v18, %v3933_v24  ;;  %v2438_v17 = vpop.eup %2437  ;;  %v1594_v24 = vadd.f32 %v3975_v29, %v3941_v50 }
 0x2dc   :  { %2447 = vtanh.f32 %v1568_v56  ;;  %v1961_v46 = vmul.f32 %v2438_v17, %v3977_v45  ;;  %v4098_v45 = vpop.permute.xlu0 %1884 }
 0x2dd   :  { %v2014_v16 = vadd.f32 %v2013_v54, %v1960_v55  ;;  %v1573_v57 = vpop.f32.mrb[26].mxu0  ;;  %v4089_v32 = vpop.f32.mrb[26].mxu1  ;;  %2449 = vtanh.f32 %v1570_v53  ;;  %v1598_v55 = vadd.f32 %v3979_v19, %v3943_v52 }
 0x2de   :  { %v2440_v27 = vpop.eup %2439  ;;  %v1574_v39 = vadd.f32 %v1573_v57, %v3935_v26  ;;  %v1575_v61 = vpop.f32.mrb[27].mxu0  ;;  %v2051_v18 = vadd.f32 %v2050_v3, %v1961_v46 }
 0x2df   :  { %v4092_v51 = vpop.f32.mrb[27].mxu1  ;;  %v1962_v56 = vmul.f32 %v2440_v27, %v3983_v41  ;;  %v1576_v35 = vadd.f32 %v1575_v61, %v3935_v26  ;;  %v2442_v54 = vpop.eup %2441 }
 0x2e0   :  { %4364 = vst [vmem:[#allocation43_spill] sm:$0xff] %v4092_v51  ;;  %2451 = vtanh.f32 %v1574_v39  ;;  %v1963_v17 = vmul.f32 %v2442_v54, %v3983_v41  ;;  %v1600_v41 = vadd.f32 %v3981_v13, %v3943_v52 }
 0x2e1   :  { %2453 = vtanh.f32 %v1592_v59  ;;  %v2015_v53 = vadd.f32 %v2014_v16, %v1962_v56  ;;  %v1579_v57 = vpop.f32.mrb[28].mxu0  ;;  %v4103_v51 = vpop.f32.mrb[28].mxu1 }
 0x2e2   :  { %v2444_v50 = vpop.eup %2443  ;;  %2455 = vtanh.f32 %v1576_v35  ;;  %v1580_v29 = vadd.f32 %v1579_v57, %v3937_v47  ;;  %v1581_v3 = vpop.f32.mrb[29].mxu0  ;;  %v2052_v46 = vadd.f32 %v2051_v18, %v1963_v17  ;;  %v1604_v17 = vadd.f32 %v3985_v25, %v3945_v58 }
 0x2e3   :  { %v4106_v26 = vpop.f32.mrb[29].mxu1  ;;  %2457 = vtanh.f32 %v1594_v24  ;;  %v1964_v59 = vmul.f32 %v2444_v50, %v3989_v23  ;;  %v1582_v27 = vadd.f32 %v1581_v3, %v3937_v47  ;;  %v2446_v19 = vpop.eup %2445  ;;  %v1610_v50 = vadd.f32 %v3991_v49, %v3947_v14 }
 0x2e4   :  { %v4110_v16 = vpop.permute.xlu1 %1406  ;;  %2459 = vtanh.f32 %v1580_v29  ;;  %v1965_v61 = vmul.f32 %v2446_v19, %v3989_v23  ;;  %v4124_v23 = vpop.permute.xlu0 %1889  ;;  %v1618_v49 = vadd.f32 %v4002_v37, %v3949_v43 }
 0x2e5   :  { %2461 = vtanh.f32 %v1598_v55  ;;  %v2016_v39 = vadd.f32 %v2015_v53, %v1964_v59  ;;  %v1585_v56 = vpop.f32.mrb[30].mxu0  ;;  %v4115_v35 = vpop.f32.mrb[30].mxu1  ;;  %v1606_v53 = vadd.f32 %v3987_v2, %v3945_v58  ;;  %v1616_v59 = vadd.f32 %v3999_v28, %v3949_v43 }
 0x2e6   :  { %v2448_v24 = vpop.eup %2447  ;;  %2463 = vtanh.f32 %v1582_v27  ;;  %v1586_v18 = vadd.f32 %v1585_v56, %v3939_v7  ;;  %v1587_v54 = vpop.f32.mrb[31].mxu0  ;;  %v2053_v55 = vadd.f32 %v2052_v46, %v1965_v61  ;;  %v1612_v46 = vadd.f32 %v3994_v10, %v3947_v14 }
 0x2e7   :  { %v4118_v47 = vpop.f32.mrb[31].mxu1  ;;  %v1966_v57 = vmul.f32 %v2448_v24, %v3997_v63  ;;  %v1588_v52 = vadd.f32 %v1587_v54, %v3939_v7  ;;  %v2450_v13 = vpop.eup %2449  ;;  %v1622_v14 = vadd.f32 %v4007_v11, %v3951_v21  ;;  %v1624_v61 = vadd.f32 %v4010_v36, %v3951_v21 }
 0x2e8   :  { %2465 = vtanh.f32 %v1586_v18  ;;  %v1967_v3 = vmul.f32 %v2450_v13, %v3997_v63  ;;  %v4136_v19 = vpop.permute.xlu1 %1411  ;;  %v4143_v28 = vpop.permute.xlu0 %1894  ;;  %v1628_v43 = vadd.f32 %v4017_v4, %v3953_v6  ;;  %v1634_v21 = vadd.f32 %v4027_v62, %v3955_v40  ;;  %v4365_v62 = vld [vmem:[#allocation23_spill] sm:$0xff] }
 0x2e9   :  { %2467 = vtanh.f32 %v1600_v41  ;;  %v2017_v29 = vadd.f32 %v2016_v39, %v1966_v57  ;;  %v1636_v4 = vadd.f32 %v4030_v8, %v3955_v40 }
 0x2ea   :  { %v2452_v25 = vpop.eup %2451  ;;  %2469 = vtanh.f32 %v1588_v52  ;;  %v2054_v27 = vadd.f32 %v2053_v55, %v1967_v3 }
 0x2eb   :  { %v2454_v7 = vpop.eup %2453  ;;  %2471 = vtanh.f32 %v1604_v17  ;;  %v1968_v58 = vmul.f32 %v2452_v25, %v4005_v22 }
 0x2ec   :  { %v2456_v2 = vpop.eup %2455  ;;  %2473 = vtanh.f32 %v1606_v53  ;;  %v4153_v55 = vpop.permute.xlu1 %1416 }
 0x2ed   :  { %v2458_v63 = vpop.eup %2457  ;;  %2475 = vtanh.f32 %v1610_v50  ;;  %v2018_v10 = vadd.f32 %v2017_v29, %v1968_v58  ;;  %v1969_v41 = vmul.f32 %v2456_v2, %v4005_v22  ;;  %v1630_v22 = vadd.f32 %v4020_v34, %v3953_v6  ;;  %v4160_v6 = vpop.permute.xlu0 %1899 }
 0x2ee   :  { %v2460_v39 = vpop.eup %2459  ;;  %2477 = vtanh.f32 %v1612_v46  ;;  %v1640_v34 = vadd.f32 %v4037_v9, %v3957_v12  ;;  %v1642_v50 = vadd.f32 %v4365_v62, %v3957_v12  ;;  %v1975_v8 = vmul.f32 %v2458_v63, %v4034_v5  ;;  %v4366_v9 = vld [vmem:[#allocation6_spill] sm:$0xff] }
 0x2ef   :  { %v2462_v56 = vpop.eup %2461  ;;  %2479 = vtanh.f32 %v1616_v59  ;;  %v2055_v37 = vadd.f32 %v2054_v27, %v1969_v41  ;;  %v1970_v24 = vmul.f32 %v2460_v39, %v4014_v30  ;;  %v1646_v46 = vadd.f32 %v4047_v38, %v4064_v0  ;;  %v4367_v38 = vld [vmem:[#allocation7_spill] sm:$0xff] }
 0x2f0   :  { %v2464_v18 = vpop.eup %2463  ;;  %2481 = vtanh.f32 %v1618_v49  ;;  %v1976_v25 = vmul.f32 %v2462_v56, %v4044_v44  ;;  %v1648_v59 = vadd.f32 %v4366_v9, %v4064_v0  ;;  %v1422_v2 = vpop.permute.xlu1 %1421  ;;  %v1658_v56 = vadd.f32 %v4067_v15, %v4110_v16 }
 0x2f1   :  { %2483 = vtanh.f32 %v1622_v14  ;;  %v2019_v11 = vadd.f32 %v2018_v10, %v1970_v24  ;;  %v1971_v54 = vmul.f32 %v2464_v18, %v4014_v30  ;;  %v1974_v30 = vmul.f32 %v2454_v7, %v4034_v5  ;;  %v4180_v39 = vpop.permute.xlu0 %1904 }
 0x2f2   :  { %v2466_v17 = vpop.eup %2465  ;;  %2485 = vtanh.f32 %v1624_v61  ;;  %v1652_v5 = vadd.f32 %v4057_v20, %v4084_v31  ;;  %v1654_v14 = vadd.f32 %v4367_v38, %v4084_v31  ;;  %v4368_v20 = vld [vmem:[#allocation24_spill] sm:$0xff]  ;;  %v1666_v15 = vadd.f32 %v4080_v33, %v4136_v19 }
 0x2f3   :  { %v2468_v36 = vpop.eup %2467  ;;  %2487 = vtanh.f32 %v1628_v43  ;;  %v2056_v57 = vadd.f32 %v2055_v37, %v1971_v54  ;;  %v1972_v52 = vmul.f32 %v2466_v17, %v4024_v1  ;;  %v1660_v37 = vadd.f32 %v4368_v20, %v4110_v16 }
 0x2f4   :  { %v2470_v13 = vpop.eup %2469  ;;  %2489 = vtanh.f32 %v1630_v22 }
 0x2f5   :  { %v2472_v53 = vpop.eup %2471  ;;  %v2020_v29 = vadd.f32 %v2019_v11, %v1972_v52  ;;  %v1973_v3 = vmul.f32 %v2470_v13, %v4024_v1  ;;  %2491 = vtanh.f32 %v1634_v21  ;;  %v1977_v1 = vmul.f32 %v2468_v36, %v4044_v44  ;;  %v1427_v36 = vpop.permute.xlu1 %1426 }
 0x2f6   :  { %v2474_v40 = vpop.eup %2473  ;;  %2493 = vtanh.f32 %v1636_v4  ;;  %v1978_v49 = vmul.f32 %v2472_v53, %v4054_v48  ;;  %v1910_v33 = vpop.permute.xlu0 %1909 }
 0x2f7   :  { %v2476_v7 = vpop.eup %2475  ;;  %v2021_v27 = vadd.f32 %v2020_v29, %v1974_v30  ;;  %v2057_v58 = vadd.f32 %v2056_v57, %v1973_v3  ;;  %2495 = vtanh.f32 %v1640_v34  ;;  %v1979_v61 = vmul.f32 %v2474_v40, %v4054_v48 }
 0x2f8   :  { %v2478_v12 = vpop.eup %2477  ;;  %2497 = vtanh.f32 %v1642_v50  ;;  %v1980_v44 = vmul.f32 %v2476_v7, %v4074_v42  ;;  %v1664_v48 = vadd.f32 %v4077_v60, %v4136_v19  ;;  %v4369_v60 = vld [vmem:[#allocation43_spill] sm:$0xff]  ;;  %v1682_v40 = vadd.f32 %v4115_v35, %v1427_v36 }
 0x2f9   :  { %v2480_v63 = vpop.eup %2479  ;;  %v2022_v10 = vadd.f32 %v2021_v27, %v1976_v25  ;;  %v2058_v41 = vadd.f32 %v2057_v58, %v1975_v8  ;;  %2499 = vtanh.f32 %v1646_v46  ;;  %v1981_v22 = vmul.f32 %v2478_v12, %v4074_v42 }
 0x2fa   :  { %v2482_v0 = vpop.eup %2481  ;;  %2501 = vtanh.f32 %v1648_v59  ;;  %v1982_v11 = vmul.f32 %v2480_v63, %v4098_v45  ;;  %v1670_v42 = vadd.f32 %v4089_v32, %v4153_v55  ;;  %v1672_v52 = vadd.f32 %v4369_v60, %v4153_v55  ;;  %v1920_v12 = vpop.permute.xlu0 %1919 }
 0x2fb   :  { %v2484_v43 = vpop.eup %2483  ;;  %v2023_v24 = vadd.f32 %v2022_v10, %v1978_v49  ;;  %v2059_v31 = vadd.f32 %v2058_v41, %v1977_v1  ;;  %2503 = vtanh.f32 %v1652_v5  ;;  %v1983_v16 = vmul.f32 %v2482_v0, %v4098_v45 }
 0x2fc   :  { %v2486_v18 = vpop.eup %2485  ;;  %2505 = vtanh.f32 %v1654_v14  ;;  %v1984_v4 = vmul.f32 %v2484_v43, %v4124_v23  ;;  %v1676_v45 = vadd.f32 %v4103_v51, %v1422_v2  ;;  %v1678_v32 = vadd.f32 %v4106_v26, %v1422_v2  ;;  %v1915_v51 = vpop.permute.xlu1 %1914 }
 0x2fd   :  { %v2488_v54 = vpop.eup %2487  ;;  %v2024_v17 = vadd.f32 %v2023_v24, %v1980_v44  ;;  %v2060_v21 = vadd.f32 %v2059_v31, %v1979_v61  ;;  %2507 = vtanh.f32 %v1658_v56  ;;  %v1985_v19 = vmul.f32 %v2486_v18, %v4124_v23 }
 0x2fe   :  { %v2490_v57 = vpop.eup %2489  ;;  %2509 = vtanh.f32 %v1660_v37  ;;  %v1986_v53 = vmul.f32 %v2488_v54, %v4143_v28  ;;  %v1684_v26 = vadd.f32 %v4118_v47, %v1427_v36  ;;  %v1930_v31 = vpop.permute.xlu0 %1929 }
 0x2ff   :  { %v2025_v13 = vadd.f32 %v2024_v17, %v1982_v11  ;;  %v2061_v30 = vadd.f32 %v2060_v21, %v1981_v22  ;;  %v2492_v34 = vpop.eup %2491  ;;  %2511 = vtanh.f32 %v1664_v48  ;;  %v1987_v55 = vmul.f32 %v2490_v57, %v4143_v28 }
 0x300   :  { %v2494_v62 = vpop.eup %2493  ;;  %2513 = vtanh.f32 %v1666_v15  ;;  %v1988_v23 = vmul.f32 %v2492_v34, %v4160_v6  ;;  %v1925_v61 = vpop.permute.xlu1 %1924 }
 0x301   :  { %v2026_v50 = vadd.f32 %v2025_v13, %v1984_v4  ;;  %v2062_v29 = vadd.f32 %v2061_v30, %v1983_v16  ;;  %v2496_v3 = vpop.eup %2495  ;;  %2515 = vtanh.f32 %v1670_v42  ;;  %v1989_v9 = vmul.f32 %v2494_v62, %v4160_v6 }
 0x302   :  { %v2498_v8 = vpop.eup %2497  ;;  %2517 = vtanh.f32 %v1672_v52  ;;  %v1990_v27 = vmul.f32 %v2496_v3, %v4180_v39  ;;  %v1940_v34 = vpop.permute.xlu0 %1939 }
 0x303   :  { %v2027_v25 = vadd.f32 %v2026_v50, %v1986_v53  ;;  %v2063_v46 = vadd.f32 %v2062_v29, %v1985_v19  ;;  %v2500_v7 = vpop.eup %2499  ;;  %2519 = vtanh.f32 %v1676_v45  ;;  %v1991_v1 = vmul.f32 %v2498_v8, %v4180_v39 }
 0x304   :  { %v2502_v59 = vpop.eup %2501  ;;  %2521 = vtanh.f32 %v1678_v32  ;;  %v1992_v49 = vmul.f32 %v2500_v7, %v1910_v33  ;;  %v1935_v42 = vpop.permute.xlu1 %1934 }
 0x305   :  { %v2028_v28 = vadd.f32 %v2027_v25, %v1988_v23  ;;  %v2064_v58 = vadd.f32 %v2063_v46, %v1987_v55  ;;  %v2504_v35 = vpop.eup %2503  ;;  %2523 = vtanh.f32 %v1682_v40  ;;  %v1993_v14 = vmul.f32 %v2502_v59, %v1910_v33 }
 0x306   :  { %v2506_v2 = vpop.eup %2505  ;;  %2525 = vtanh.f32 %v1684_v26  ;;  %v1994_v47 = vmul.f32 %v2504_v35, %v1915_v51  ;;  %v4370_v26 = vld [vmem:[#allocation39_spill] sm:$0xff] }
 0x307   :  { %v2029_v5 = vadd.f32 %v2028_v28, %v1990_v27  ;;  %v2065_v63 = vadd.f32 %v2064_v58, %v1989_v9  ;;  %v2508_v38 = vpop.eup %2507  ;;  %v1995_v56 = vmul.f32 %v2506_v2, %v1915_v51  ;;  %v2558_v2 = vmov 1966171168  }
 0x308   :  { %v2510_v6 = vpop.eup %2509  ;;  %v1996_v43 = vmul.f32 %v2508_v38, %v1920_v12  ;;  %v2084_v7 = vpop.permute.xlu1 %2083 }
 0x309   :  { %v2030_v10 = vadd.f32 %v2029_v5, %v1992_v49  ;;  %v2066_v41 = vadd.f32 %v2065_v63, %v1991_v1  ;;  %v2512_v0 = vpop.eup %2511  ;;  %v1997_v18 = vmul.f32 %v2510_v6, %v1920_v12  ;;  %v2089_v59 = vrot.slane %v2084_v7, %v4370_v26 }
 0x30a   :  { %v2514_v44 = vpop.eup %2513  ;;  %v1998_v22 = vmul.f32 %v2512_v0, %v1925_v61  ;;  %v2100_v1 = vunpack.c.l.s4 %v2558_v2  ;;  %v4372_v0 = vlaneseq }
 0x30b   :  { %v2031_v20 = vadd.f32 %v2030_v10, %v1994_v47  ;;  %v2067_v37 = vadd.f32 %v2066_v41, %v1993_v14  ;;  %v2516_v24 = vpop.eup %2515  ;;  %v1999_v17 = vmul.f32 %v2514_v44, %v1925_v61  ;;  %v4371_v14 = vld [vmem:[#allocation36_spill] sm:$0xff] }
 0x30c   :  { %v2518_v39 = vpop.eup %2517  ;;  %v2000_v21 = vmul.f32 %v2516_v24, %v1930_v31  ;;  %v2101_v49 = vunpack.c.0.s8 %v2100_v1  ;;  %vm2116_vm0 = vcmp.lt.s32.totalorder %v4372_v0, 256 }
 0x30d   :  { %v2032_v11 = vadd.f32 %v2031_v20, %v1996_v43  ;;  %v2068_v48 = vadd.f32 %v2067_v37, %v1995_v56  ;;  %v2520_v54 = vpop.eup %2519  ;;  %v2001_v57 = vmul.f32 %v2518_v39, %v1930_v31 }
 0x30e   :  { %v2522_v15 = vpop.eup %2521  ;;  %v2002_v60 = vmul.f32 %v2520_v54, %v1935_v42  ;;  %v2104_v47 = vsub.s32 %v2101_v49, %v4371_v14 }
 0x30f   :  { %v2033_v36 = vadd.f32 %v2032_v11, %v1998_v22  ;;  %v2069_v16 = vadd.f32 %v2068_v48, %v1997_v18  ;;  %v2524_v4 = vpop.eup %2523  ;;  %v2003_v33 = vmul.f32 %v2522_v15, %v1935_v42 }
 0x310   :  { %v2526_v30 = vpop.eup %2525  ;;  %v2004_v19 = vmul.f32 %v2524_v4, %v1940_v34 }
 0x311   :  { %v2034_v52 = vadd.f32 %v2033_v36, %v2000_v21  ;;  %v2070_v13 = vadd.f32 %v2069_v16, %v1999_v17  ;;  %v2005_v32 = vmul.f32 %v2526_v30, %v1940_v34 }
 0x313   :  { %v2035_v53 = vadd.f32 %v2034_v52, %v2002_v60  ;;  %v2071_v45 = vadd.f32 %v2070_v13, %v2001_v57 }
 0x315   :  { %v2036_v62 = vadd.f32 %v2035_v53, %v2004_v19  ;;  %v2072_v50 = vadd.f32 %v2071_v45, %v2003_v33 }
 0x317   :  { %v2037_v29 = vrot.slane %v2036_v62, 4  ;;  %v2073_v3 = vadd.f32 %v2072_v50, %v2005_v32 }
 0x319   :  { %v2038_v55 = vadd.f32 %v2037_v29, %v2036_v62  ;;  %v2074_v40 = vrot.slane %v2073_v3, 4 }
 0x31b   :  { %v2039_v8 = vrot.slane %v2038_v55, 2  ;;  %v2075_v23 = vadd.f32 %v2074_v40, %v2073_v3 }
 0x31d   :  { %v2076_v25 = vrot.slane %v2075_v23, 2  ;;  %v2040_v46 = vadd.f32 %v2039_v8, %v2038_v55 }
 0x31f   :  { %v2041_v51 = vrot.slane %v2040_v46, 1  ;;  %v2077_v9 = vadd.f32 %v2076_v25, %v2075_v23 }
 0x321   :  { %v2042_v27 = vadd.f32 %v2041_v51, %v2040_v46  ;;  %v2078_v28 = vrot.slane %v2077_v9, 1 }
 0x323   :  { %v2079_v58 = vadd.f32 %v2078_v28, %v2077_v9  ;;  %v2090_v35 = vadd.f32 %v2089_v59, %v2042_v27 }
 0x325   :  { %v2091_v12 = vadd.f32 %v2089_v59, %v2079_v58  ;;  %2527 = vtanh.f32 %v2090_v35 }
 0x327   :  { %2529 = vtanh.f32 %v2091_v12 }
 0x32f   :  { %v2528_v5 = vpop.eup %2527 }
 0x330   :  { %v2094_v63 = vmul.f32 2.0, %v2528_v5 }
 0x331   :  { %v2530_v38 = vpop.eup %2529 }
 0x332   :  { %v2095_v6 = vmul.f32 2.0, %v2530_v38 }
 0x334   :  { %v2098_v10 = vcombine.low %v2094_v63, %v2095_v6 }
 0x336   :  { %v2105_v41 = vrot.slane %v2098_v10, %v2104_v47 }
 0x338   :  { %v2112_v61 = vrot.slane %v2105_v41, %v2104_v47 }
 0x33a   :  { %2118 = vst.msk [vmem:[#allocation3] sm:$0x3] %vm2116_vm0, %v2112_v61 }
 0x33b   :  { %2542 = shalt.err (!%p2539_p4)
}
 0x33c   :  { %s2543_s15 = scalar_lea.hbm %s4233_s7, 32 }
 0x33d   :  { %p2544_p5 = scmp.ne.s32.totalorder %s4233_s7, %s2543_s15  ;;  %p2547_p6 = scmp.lt.u32.totalorder %s2543_s15, %s4233_s7 }
 0x33f   :  { %p2549_p7 = pnand %p2547_p6, %p2544_p5 }
 0x341   :  { %2552 = shalt.err (!%p2549_p7)
}
 0x342   :  { %2128 = dma.vmem_to_hbm [thread:$0]  %s2126_s11, 32, %s4233_s7, [#allocation4]  }
 0x343   :  { %2553 = dma.done.wait [#allocation4], 32  }
 0x344   :  { %2554 = vsyncadd [#allocation4], 4294967264 }
 0x345   :  { %2132 = vsyncpa [#allocation4], 1 }

</bundles_post_ra>
